<compile_context>
chip_gen: v7x
topology: tpu7x:2x2x1
jax: 0.10.0
libtpu: 0.0.40
codegen_flags: <defaults>
</compile_context>

<pallas_src>
import functools
import math

import jax
import jax.numpy as jnp
from jax.experimental import pallas as pl
from jax.experimental.pallas import tpu as pltpu

# ---- small synthetic GPTBigCode config ----
VOCAB = 64
EMB_DIM = 32
NHEADS = 4
NLAYERS = 2
MAX_SEQ = 16
PAD_ID = 0
HIDDEN = int(4.0 * EMB_DIM)          # hidden_grow_factor = 4.0 -> 128
LN_EPS = 1e-5
HEAD_DIM = EMB_DIM // NHEADS         # 8; multiquery_attn=True -> 1 kv head
LANES = 128
NEG_INF = -1e30


def _layernorm(x, w, b, eps):
    mu = jnp.mean(x, axis=-1, keepdims=True)
    var = jnp.mean((x - mu) ** 2, axis=-1, keepdims=True)
    return (x - mu) * jax.lax.rsqrt(var + eps) * w + b


def _gelu_tanh(x):
    c = 0.7978845608028654  # sqrt(2/pi)
    return 0.5 * x * (1.0 + jnp.tanh(c * (x + 0.044715 * x * x * x)))


def gpt_model_kernel(x_ref, vecs_ref, wattn_ref, wo_ref, w1_ref, w2_ref, o_ref,
                     *, seq, nheads, nlayers, eps, fast_layout):
    """One grid step == one batch element (grid=(B,), 'parallel' for megacore)."""
    S, H = seq, nheads
    D = wattn_ref.shape[1]
    HID = w1_ref.shape[2]
    hd = D // H
    scale = 1.0 / math.sqrt(hd)
    bf16 = jnp.bfloat16

    # Activation slab for this batch element, logical layout [S, D] (f32).
    if fast_layout:
        x = x_ref[...].reshape(S, D)      # lane-dense [1, S*D/128, 128] in HBM/VMEM
    else:
        x = x_ref[...]                    # [S, D]

    # Additive causal mask, built ONCE and reused by every layer.
    n_iota = jax.lax.broadcasted_iota(jnp.int32, (1, H * S, S), 1)
    k_iota = jax.lax.broadcasted_iota(jnp.int32, (1, H * S, S), 2)
    # fast_layout row n = s*H + h  -> query pos = n // H
    # fallback    row n = h*S + s  -> query pos = n %  S
    qpos = (n_iota // H) if fast_layout else (n_iota % S)
    mask_add = jnp.where(qpos >= k_iota, 0.0, NEG_INF).astype(jnp.float32)

    def vrow(i):                          # packed LN/bias row -> [1, 128] f32
        return vecs_ref[i:i + 1, :]

    for l in range(nlayers):
        r = 8 * l
        # ---------------- attention sub-layer ----------------
        h = _layernorm(x, vrow(r + 0)[:, :D], vrow(r + 1)[:, :D], eps)
        # fused QKV projection: bf16 operands, f32 accumulation
        qkv = jnp.dot(h.astype(bf16), wattn_ref[l],
                      preferred_element_type=jnp.float32) + vrow(r + 4)[:, :D + 2 * hd]
        q = qkv[:, :D]                                    # [S, D], head-major lanes
        k3 = qkv[:, D:D + hd].reshape(1, S, hd)           # single KV head (MQA)
        v3 = qkv[:, D + hd:D + 2 * hd].reshape(1, S, hd)

        # Stack all heads along rows (shared K/V): [1, H*S, hd].
        if fast_layout:
            qh = q.reshape(1, S * H, hd)                  # one relayout, no concat
        else:
            qh = jnp.concatenate(
                [q[:, n * hd:(n + 1) * hd].reshape(1, S, hd) for n in range(H)],
                axis=1)

        sc = jnp.einsum('bnd,bkd->bnk', qh.astype(bf16), k3.astype(bf16),
                        preferred_element_type=jnp.float32)       # [1, H*S, S]
        sc = sc * scale + mask_add
        m = jnp.max(sc, axis=-1, keepdims=True)
        p = jnp.exp(sc - m)
        p = p * pl.reciprocal(jnp.sum(p, axis=-1, keepdims=True), approx=True)
        oh = jnp.einsum('bnk,bkd->bnd', p.astype(bf16), v3.astype(bf16),
                        preferred_element_type=jnp.float32)       # [1, H*S, hd]

        # Back to [S, D] (head-major lanes) and ONE output projection.
        if fast_layout:
            attn = oh.reshape(S, D)
        else:
            attn = jnp.concatenate(
                [oh[:, n * S:(n + 1) * S, :].reshape(S, hd) for n in range(H)],
                axis=1)
        attn = jnp.dot(attn.astype(bf16), wo_ref[l],
                       preferred_element_type=jnp.float32) + vrow(r + 5)[:, :D]
        x = x + attn

        # ---------------- feed-forward sub-layer ----------------
        h2 = _layernorm(x, vrow(r + 2)[:, :D], vrow(r + 3)[:, :D], eps)
        z = jnp.dot(h2.astype(bf16), w1_ref[l],
                    preferred_element_type=jnp.float32) + vrow(r + 6)[:, :HID]
        g = _gelu_tanh(z)
        x = x + jnp.dot(g.astype(bf16), w2_ref[l],
                        preferred_element_type=jnp.float32) + vrow(r + 7)[:, :D]

    # ---------------- final decoder LayerNorm ----------------
    out = _layernorm(x, vrow(8 * nlayers)[:, :D], vrow(8 * nlayers + 1)[:, :D], eps)
    if fast_layout:
        o_ref[...] = out.reshape(o_ref.shape)             # lane-dense store
    else:
        o_ref[...] = out


def build_forward(fast_layout: bool):
    @jax.jit
    def forward(tokens, emb, pos, params):
        B, S = tokens.shape
        D = emb.shape[1]

        # --- JAX glue: embeddings and position ids (data-dependent gathers) ---
        x_emb = emb[tokens]                                           # [B, S, D]
        is_pad = tokens == PAD_ID
        position_ids = jnp.clip(
            jnp.cumsum((~is_pad).astype(jnp.int32), axis=1) - 1, 0, None)
        pos_out = pos[position_ids] * (~is_pad)[..., None].astype(jnp.float32)
        x = x_emb + pos_out                                           # [B, S, D]

        kernel = functools.partial(
            gpt_model_kernel, seq=S, nheads=NHEADS, nlayers=NLAYERS,
            eps=LN_EPS, fast_layout=fast_layout)

        if fast_layout:
            assert (S * D) % LANES == 0
            rows = S * D // LANES
            x_in = x.reshape(B, rows, LANES)                # lane-dense slab
            io_spec = pl.BlockSpec((1, rows, LANES), lambda b: (b, 0, 0))
            out_shape = jax.ShapeDtypeStruct((B, rows, LANES), jnp.float32)
        else:
            x_in = x.reshape(B * S, D)
            io_spec = pl.BlockSpec((S, D), lambda b: (b, 0))
            out_shape = jax.ShapeDtypeStruct((B * S, D), jnp.float32)

        def whole(arr):   # weights/biases stay VMEM-resident across grid steps
            n = arr.ndim
            return pl.BlockSpec(arr.shape, lambda b: (0,) * n)

        vecs, wattn = params["vecs"], params["w_attn"]
        wo, w1, w2 = params["wo"], params["w1"], params["w2"]

        out = pl.pallas_call(
            kernel,
            grid=(B,),
            out_shape=out_shape,
            in_specs=[io_spec, whole(vecs), whole(wattn),
                      whole(wo), whole(w1), whole(w2)],
            out_specs=io_spec,
            compiler_params=pltpu.CompilerParams(
                dimension_semantics=("parallel",)),
        )(x_in, vecs, wattn, wo, w1, w2)
        return out.reshape(B, S, D)

    return forward


@jax.jit
def ref_forward(tokens, emb, pos, params):
    """Pure-JAX f32 reference (same math, no Pallas) used as a sanity check."""
    B, S = tokens.shape
    D = emb.shape[1]
    H, hd = NHEADS, EMB_DIM // NHEADS
    vecs = params["vecs"]
    f32 = lambda a: a.astype(jnp.float32)

    x_emb = emb[tokens]
    is_pad = tokens == PAD_ID
    position_ids = jnp.clip(
        jnp.cumsum((~is_pad).astype(jnp.int32), axis=1) - 1, 0, None)
    x = x_emb + pos[position_ids] * (~is_pad)[..., None].astype(jnp.float32)

    causal = jnp.tril(jnp.ones((S, S), bool))
    for l in range(NLAYERS):
        r = 8 * l
        h = _layernorm(x, vecs[r + 0, :D], vecs[r + 1, :D], LN_EPS)
        qkv = h @ f32(params["w_attn"][l]) + vecs[r + 4, :D + 2 * hd]
        q = qkv[..., :D].reshape(B, S, H, hd)
        k = qkv[..., D:D + hd]
        v = qkv[..., D + hd:D + 2 * hd]
        sc = jnp.einsum('bshd,bkd->bhsk', q, k) / math.sqrt(hd)
        sc = jnp.where(causal[None, None], sc, -jnp.inf)
        p = jax.nn.softmax(sc, axis=-1)
        o = jnp.einsum('bhsk,bkd->bshd', p, v).reshape(B, S, D)
        x = x + o @ f32(params["wo"][l]) + vecs[r + 5, :D]
        h2 = _layernorm(x, vecs[r + 2, :D], vecs[r + 3, :D], LN_EPS)
        z = h2 @ f32(params["w1"][l]) + vecs[r + 6, :HIDDEN]
        x = x + _gelu_tanh(z) @ f32(params["w2"][l]) + vecs[r + 7, :D]
    return _layernorm(x, vecs[8 * NLAYERS, :D], vecs[8 * NLAYERS + 1, :D], LN_EPS)


def init_params(key):
    keys = jax.random.split(key, 2 + NLAYERS)
    emb = jax.random.normal(keys[0], (VOCAB, EMB_DIM), jnp.float32) * 0.02
    pos = jax.random.normal(keys[1], (MAX_SEQ, EMB_DIM), jnp.float32) * 0.02

    def lin(k, shape):
        return jax.random.normal(k, shape, jnp.float32) * 0.02

    def pad_row(v):                      # [width] -> [1, 128] zero-padded
        v = v.reshape(1, -1)
        return jnp.pad(v, ((0, 0), (0, HIDDEN - v.shape[-1])))

    # Packed per-layer rows: [ln_w, ln_b, ffln_w, ffln_b, b_attn, bo, b1, b2];
    # final two rows = decoder-norm (w, b).
    vec_rows = []
    w_attn, wo, w1, w2 = [], [], [], []
    for i in range(NLAYERS):
        lk = jax.random.split(keys[2 + i], 8)
        wa = lin(lk[0], (EMB_DIM, EMB_DIM + 2 * HEAD_DIM))   # fused q|k|v
        ba = lin(lk[1], (EMB_DIM + 2 * HEAD_DIM,))
        wo_ = lin(lk[2], (EMB_DIM, EMB_DIM))
        bo_ = lin(lk[3], (EMB_DIM,))
        w1_ = lin(lk[4], (EMB_DIM, HIDDEN))
        b1_ = lin(lk[5], (HIDDEN,))
        w2_ = lin(lk[6], (HIDDEN, EMB_DIM))
        b2_ = lin(lk[7], (EMB_DIM,))
        vec_rows += [pad_row(jnp.ones((EMB_DIM,))), pad_row(jnp.zeros((EMB_DIM,))),
                     pad_row(jnp.ones((EMB_DIM,))), pad_row(jnp.zeros((EMB_DIM,))),
                     pad_row(ba), pad_row(bo_), pad_row(b1_), pad_row(b2_)]
        w_attn.append(wa); wo.append(wo_); w1.append(w1_); w2.append(w2_)
    vec_rows += [pad_row(jnp.ones((EMB_DIM,))), pad_row(jnp.zeros((EMB_DIM,)))]

    params = dict(
        vecs=jnp.concatenate(vec_rows, axis=0).astype(jnp.float32),   # [18, 128]
        w_attn=jnp.stack(w_attn).astype(jnp.bfloat16),
        wo=jnp.stack(wo).astype(jnp.bfloat16),
        w1=jnp.stack(w1).astype(jnp.bfloat16),
        w2=jnp.stack(w2).astype(jnp.bfloat16),
    )
    return emb, pos, params


if __name__ == "__main__":
    key = jax.random.PRNGKey(0)
    pkey, tkey = jax.random.split(key)
    emb, pos, params = init_params(pkey)

    B, S = 2, 8
    tokens = jax.random.randint(tkey, (B, S), 0, VOCAB)
    tokens = tokens.at[0, 6:].set(PAD_ID)   # include pad tokens

    out = None
    for fast_layout in (True, False):
        try:
            fwd = build_forward(fast_layout)
            out = jax.block_until_ready(fwd(tokens, emb, pos, params))
            ref = jax.block_until_ready(ref_forward(tokens, emb, pos, params))
            max_err = float(jnp.max(jnp.abs(out - ref)))
            assert out.shape == ref.shape
            assert max_err < 0.25, f"mismatch vs reference: {max_err}"
            break
        except Exception:
            # TODO(synk): if this Mosaic build rejects the lane/head reshapes,
            # retry with the slice+concat fallback formulation (same math).
            if not fast_layout:
                raise
            out = None

    assert out is not None
    assert out.shape == (B, S, EMB_DIM) and out.dtype == jnp.float32
    print("KERNEL_OK")
</pallas_src>

<mosaic_0001>
module attributes {stable_mosaic.version = 11 : i64} {
  func.func @gpt_model_kernel(%arg0: i32, %arg1: memref<8x32xf32, #tpu.memory_space<vmem>>, %arg2: memref<18x128xf32, #tpu.memory_space<vmem>>, %arg3: memref<2x32x48xbf16, #tpu.memory_space<vmem>>, %arg4: memref<2x32x32xbf16, #tpu.memory_space<vmem>>, %arg5: memref<2x32x128xbf16, #tpu.memory_space<vmem>>, %arg6: memref<2x128x32xbf16, #tpu.memory_space<vmem>>, %arg7: memref<8x32xf32, #tpu.memory_space<vmem>>) attributes {dimension_semantics = [#tpu.dimension_semantics<parallel>], iteration_bounds = array<i64: 2>, scalar_prefetch = 0 : i64, scratch_operands = 0 : i64, tpu.core_type = #tpu.core_type<tc>, window_params = [{transform_indices = @transform_0, window_bounds = array<i64: 8, 32>}, {pipeline_mode = #tpu.pipeline_mode<synchronous>, transform_indices = @transform_1, window_bounds = array<i64: 18, 128>}, {pipeline_mode = #tpu.pipeline_mode<synchronous>, transform_indices = @transform_2, window_bounds = array<i64: 2, 32, 48>}, {pipeline_mode = #tpu.pipeline_mode<synchronous>, transform_indices = @transform_3, window_bounds = array<i64: 2, 32, 32>}, {pipeline_mode = #tpu.pipeline_mode<synchronous>, transform_indices = @transform_4, window_bounds = array<i64: 2, 32, 128>}, {pipeline_mode = #tpu.pipeline_mode<synchronous>, transform_indices = @transform_5, window_bounds = array<i64: 2, 128, 32>}, {transform_indices = @transform_6, window_bounds = array<i64: 8, 32>}]} {
    %c0 = arith.constant 0 : index
    %c0_0 = arith.constant 0 : index
    %0 = vector.load %arg1[%c0, %c0_0] : memref<8x32xf32, #tpu.memory_space<vmem>>, vector<8x32xf32>
    %1 = tpu.iota {dimensions = array<i32: 1>} : vector<1x32x8xi32>
    %2 = tpu.iota {dimensions = array<i32: 2>} : vector<1x32x8xi32>
    %c8_i32 = arith.constant 8 : i32
    %c0_i32 = arith.constant 0 : i32
    %3 = arith.cmpi eq, %c8_i32, %c0_i32 : i32
    %c1_i32 = arith.constant 1 : i32
    %4 = arith.select %3, %c1_i32, %c8_i32 : i32
    %5 = vector.broadcast %4 : i32 to vector<1x32x8xi32>
    %6 = arith.remsi %1, %5 : vector<1x32x8xi32>
    %c0_i32_1 = arith.constant 0 : i32
    %7 = vector.broadcast %c0_i32_1 : i32 to vector<1x32x8xi32>
    %8 = arith.cmpi ne, %6, %7 : vector<1x32x8xi32>
    %c0_i32_2 = arith.constant 0 : i32
    %9 = vector.broadcast %c0_i32_2 : i32 to vector<1x32x8xi32>
    %10 = arith.cmpi slt, %6, %9 : vector<1x32x8xi32>
    %c0_i32_3 = arith.constant 0 : i32
    %11 = arith.cmpi slt, %4, %c0_i32_3 : i32
    %12 = vector.broadcast %11 : i1 to vector<1x32x8xi1>
    %13 = vector.broadcast %12 : vector<1x32x8xi1> to vector<1x32x8xi1>
    %14 = arith.xori %10, %13 : vector<1x32x8xi1>
    %15 = arith.andi %14, %8 : vector<1x32x8xi1>
    %16 = vector.broadcast %4 : i32 to vector<1x32x8xi32>
    %17 = arith.addi %6, %16 : vector<1x32x8xi32>
    %18 = arith.select %15, %17, %6 : vector<1x32x8xi1>, vector<1x32x8xi32>
    %19 = arith.cmpi sge, %18, %2 : vector<1x32x8xi32>
    %cst = arith.constant 0.000000e+00 : f32
    %cst_4 = arith.constant -1.000000e+30 : f32
    %20 = vector.broadcast %cst : f32 to vector<1x32x8xf32>
    %21 = vector.broadcast %cst_4 : f32 to vector<1x32x8xf32>
    %22 = arith.select %19, %20, %21 : vector<1x32x8xi1>, vector<1x32x8xf32>
    %c0_5 = arith.constant 0 : index
    %c0_6 = arith.constant 0 : index
    %23 = vector.load %arg2[%c0_5, %c0_6] : memref<18x128xf32, #tpu.memory_space<vmem>>, vector<1x128xf32>
    %24 = vector.extract_strided_slice %23 {offsets = [0, 0], sizes = [1, 32], strides = [1, 1]} : vector<1x128xf32> to vector<1x32xf32>
    %c1 = arith.constant 1 : index
    %c0_7 = arith.constant 0 : index
    %25 = vector.load %arg2[%c1, %c0_7] : memref<18x128xf32, #tpu.memory_space<vmem>>, vector<1x128xf32>
    %26 = vector.extract_strided_slice %25 {offsets = [0, 0], sizes = [1, 32], strides = [1, 1]} : vector<1x128xf32> to vector<1x32xf32>
    %cst_8 = arith.constant dense<0.000000e+00> : vector<8xf32>
    %27 = vector.multi_reduction <add>, %0, %cst_8 [1] : vector<8x32xf32> to vector<8xf32>
    %28 = vector.shape_cast %27 : vector<8xf32> to vector<8x1xf32>
    %cst_9 = arith.constant 3.200000e+01 : f32
    %29 = vector.broadcast %cst_9 : f32 to vector<8x1xf32>
    %30 = arith.divf %28, %29 : vector<8x1xf32>
    %31 = vector.broadcast %30 : vector<8x1xf32> to vector<8x32xf32>
    %32 = arith.subf %0, %31 : vector<8x32xf32>
    %33 = arith.mulf %32, %32 : vector<8x32xf32>
    %cst_10 = arith.constant dense<0.000000e+00> : vector<8xf32>
    %34 = vector.multi_reduction <add>, %33, %cst_10 [1] : vector<8x32xf32> to vector<8xf32>
    %35 = vector.shape_cast %34 : vector<8xf32> to vector<8x1xf32>
    %cst_11 = arith.constant 3.200000e+01 : f32
    %36 = vector.broadcast %cst_11 : f32 to vector<8x1xf32>
    %37 = arith.divf %35, %36 : vector<8x1xf32>
    %38 = vector.broadcast %30 : vector<8x1xf32> to vector<8x32xf32>
    %39 = arith.subf %0, %38 : vector<8x32xf32>
    %cst_12 = arith.constant 9.99999974E-6 : f32
    %40 = vector.broadcast %cst_12 : f32 to vector<8x1xf32>
    %41 = arith.addf %37, %40 : vector<8x1xf32>
    %42 = math.rsqrt %41 : vector<8x1xf32>
    %43 = vector.broadcast %42 : vector<8x1xf32> to vector<8x32xf32>
    %44 = arith.mulf %39, %43 : vector<8x32xf32>
    %45 = vector.broadcast %24 : vector<1x32xf32> to vector<8x32xf32>
    %46 = arith.mulf %44, %45 : vector<8x32xf32>
    %47 = vector.broadcast %26 : vector<1x32xf32> to vector<8x32xf32>
    %48 = arith.addf %46, %47 : vector<8x32xf32>
    %49 = arith.truncf %48 : vector<8x32xf32> to vector<8x32xbf16>
    %c0_13 = arith.constant 0 : index
    %c0_14 = arith.constant 0 : index
    %c0_15 = arith.constant 0 : index
    %50 = vector.load %arg3[%c0_13, %c0_14, %c0_15] : memref<2x32x48xbf16, #tpu.memory_space<vmem>>, vector<1x32x48xbf16>
    %51 = vector.shape_cast %50 : vector<1x32x48xbf16> to vector<32x48xbf16>
    %cst_16 = arith.constant dense<0.000000e+00> : vector<8x48xf32>
    %52 = tpu.matmul %49, %51, %cst_16 {dimension_numbers = #tpu.dot_dimension_numbers<[1], [0], [0], [1], [0, 0, 1, 1], [], []>} : vector<8x32xbf16>, vector<32x48xbf16>, vector<8x48xf32> -> vector<8x48xf32>
    %c4 = arith.constant 4 : index
    %c0_17 = arith.constant 0 : index
    %53 = vector.load %arg2[%c4, %c0_17] : memref<18x128xf32, #tpu.memory_space<vmem>>, vector<1x128xf32>
    %54 = vector.extract_strided_slice %53 {offsets = [0, 0], sizes = [1, 48], strides = [1, 1]} : vector<1x128xf32> to vector<1x48xf32>
    %55 = vector.broadcast %54 : vector<1x48xf32> to vector<8x48xf32>
    %56 = arith.addf %52, %55 : vector<8x48xf32>
    %57 = vector.extract_strided_slice %56 {offsets = [0, 0], sizes = [8, 32], strides = [1, 1]} : vector<8x48xf32> to vector<8x32xf32>
    %58 = vector.extract_strided_slice %56 {offsets = [0, 32], sizes = [8, 8], strides = [1, 1]} : vector<8x48xf32> to vector<8x8xf32>
    %59 = vector.shape_cast %58 : vector<8x8xf32> to vector<1x8x8xf32>
    %60 = vector.extract_strided_slice %56 {offsets = [0, 40], sizes = [8, 8], strides = [1, 1]} : vector<8x48xf32> to vector<8x8xf32>
    %61 = vector.shape_cast %60 : vector<8x8xf32> to vector<1x8x8xf32>
    %62 = vector.extract_strided_slice %57 {offsets = [0, 0], sizes = [8, 8], strides = [1, 1]} : vector<8x32xf32> to vector<8x8xf32>
    %63 = vector.shape_cast %62 : vector<8x8xf32> to vector<1x8x8xf32>
    %64 = vector.extract_strided_slice %57 {offsets = [0, 8], sizes = [8, 8], strides = [1, 1]} : vector<8x32xf32> to vector<8x8xf32>
    %65 = vector.shape_cast %64 : vector<8x8xf32> to vector<1x8x8xf32>
    %66 = vector.extract_strided_slice %57 {offsets = [0, 16], sizes = [8, 8], strides = [1, 1]} : vector<8x32xf32> to vector<8x8xf32>
    %67 = vector.shape_cast %66 : vector<8x8xf32> to vector<1x8x8xf32>
    %68 = vector.extract_strided_slice %57 {offsets = [0, 24], sizes = [8, 8], strides = [1, 1]} : vector<8x32xf32> to vector<8x8xf32>
    %69 = vector.shape_cast %68 : vector<8x8xf32> to vector<1x8x8xf32>
    %70 = tpu.concatenate %63, %65, %67, %69 in 1 : vector<1x8x8xf32>, vector<1x8x8xf32>, vector<1x8x8xf32>, vector<1x8x8xf32> -> vector<1x32x8xf32>
    %71 = arith.truncf %70 : vector<1x32x8xf32> to vector<1x32x8xbf16>
    %72 = arith.truncf %59 : vector<1x8x8xf32> to vector<1x8x8xbf16>
    "tpu.trace_start"() <{level = 10 : i32, message = "bnd,bkd->bnk"}> : () -> ()
    %cst_18 = arith.constant dense<0.000000e+00> : vector<1x32x8xf32>
    %73 = tpu.matmul %71, %72, %cst_18 {dimension_numbers = #tpu.dot_dimension_numbers<[2], [2], [1], [1], [0, 0, 0, 1, 1, 1], [0], [0]>} : vector<1x32x8xbf16>, vector<1x8x8xbf16>, vector<1x32x8xf32> -> vector<1x32x8xf32>
    "tpu.trace_stop"() : () -> ()
    %cst_19 = arith.constant 0.353553385 : f32
    %74 = vector.broadcast %cst_19 : f32 to vector<1x32x8xf32>
    %75 = arith.mulf %73, %74 : vector<1x32x8xf32>
    %76 = arith.addf %75, %22 : vector<1x32x8xf32>
    %cst_20 = arith.constant dense<0xFF800000> : vector<1x32xf32>
    %77 = vector.multi_reduction <maximumf>, %76, %cst_20 [2] : vector<1x32x8xf32> to vector<1x32xf32>
    %78 = vector.shape_cast %77 : vector<1x32xf32> to vector<1x32x1xf32>
    %79 = vector.broadcast %78 : vector<1x32x1xf32> to vector<1x32x8xf32>
    %80 = arith.subf %76, %79 : vector<1x32x8xf32>
    %81 = math.exp %80 : vector<1x32x8xf32>
    %cst_21 = arith.constant dense<0.000000e+00> : vector<1x32xf32>
    %82 = vector.multi_reduction <add>, %81, %cst_21 [2] : vector<1x32x8xf32> to vector<1x32xf32>
    %83 = vector.shape_cast %82 : vector<1x32xf32> to vector<1x32x1xf32>
    %84 = tpu.reciprocal %83 {approx = true} : vector<1x32x1xf32> -> vector<1x32x1xf32>
    %85 = vector.broadcast %84 : vector<1x32x1xf32> to vector<1x32x8xf32>
    %86 = arith.mulf %81, %85 : vector<1x32x8xf32>
    %87 = arith.truncf %86 : vector<1x32x8xf32> to vector<1x32x8xbf16>
    %88 = arith.truncf %61 : vector<1x8x8xf32> to vector<1x8x8xbf16>
    "tpu.trace_start"() <{level = 10 : i32, message = "bnk,bkd->bnd"}> : () -> ()
    %cst_22 = arith.constant dense<0.000000e+00> : vector<1x32x8xf32>
    %89 = tpu.matmul %87, %88, %cst_22 {dimension_numbers = #tpu.dot_dimension_numbers<[2], [1], [1], [2], [0, 0, 0, 1, 1, 2], [0], [0]>} : vector<1x32x8xbf16>, vector<1x8x8xbf16>, vector<1x32x8xf32> -> vector<1x32x8xf32>
    "tpu.trace_stop"() : () -> ()
    %90 = vector.extract_strided_slice %89 {offsets = [0, 0, 0], sizes = [1, 8, 8], strides = [1, 1, 1]} : vector<1x32x8xf32> to vector<1x8x8xf32>
    %91 = vector.shape_cast %90 : vector<1x8x8xf32> to vector<8x8xf32>
    %92 = vector.extract_strided_slice %89 {offsets = [0, 8, 0], sizes = [1, 8, 8], strides = [1, 1, 1]} : vector<1x32x8xf32> to vector<1x8x8xf32>
    %93 = vector.shape_cast %92 : vector<1x8x8xf32> to vector<8x8xf32>
    %94 = vector.extract_strided_slice %89 {offsets = [0, 16, 0], sizes = [1, 8, 8], strides = [1, 1, 1]} : vector<1x32x8xf32> to vector<1x8x8xf32>
    %95 = vector.shape_cast %94 : vector<1x8x8xf32> to vector<8x8xf32>
    %96 = vector.extract_strided_slice %89 {offsets = [0, 24, 0], sizes = [1, 8, 8], strides = [1, 1, 1]} : vector<1x32x8xf32> to vector<1x8x8xf32>
    %97 = vector.shape_cast %96 : vector<1x8x8xf32> to vector<8x8xf32>
    %98 = tpu.concatenate %91, %93, %95, %97 in 1 : vector<8x8xf32>, vector<8x8xf32>, vector<8x8xf32>, vector<8x8xf32> -> vector<8x32xf32>
    %99 = arith.truncf %98 : vector<8x32xf32> to vector<8x32xbf16>
    %c0_23 = arith.constant 0 : index
    %c0_24 = arith.constant 0 : index
    %c0_25 = arith.constant 0 : index
    %100 = vector.load %arg4[%c0_23, %c0_24, %c0_25] : memref<2x32x32xbf16, #tpu.memory_space<vmem>>, vector<1x32x32xbf16>
    %101 = vector.shape_cast %100 : vector<1x32x32xbf16> to vector<32x32xbf16>
    %cst_26 = arith.constant dense<0.000000e+00> : vector<8x32xf32>
    %102 = tpu.matmul %99, %101, %cst_26 {dimension_numbers = #tpu.dot_dimension_numbers<[1], [0], [0], [1], [0, 0, 1, 1], [], []>} : vector<8x32xbf16>, vector<32x32xbf16>, vector<8x32xf32> -> vector<8x32xf32>
    %c5 = arith.constant 5 : index
    %c0_27 = arith.constant 0 : index
    %103 = vector.load %arg2[%c5, %c0_27] : memref<18x128xf32, #tpu.memory_space<vmem>>, vector<1x128xf32>
    %104 = vector.extract_strided_slice %103 {offsets = [0, 0], sizes = [1, 32], strides = [1, 1]} : vector<1x128xf32> to vector<1x32xf32>
    %105 = vector.broadcast %104 : vector<1x32xf32> to vector<8x32xf32>
    %106 = arith.addf %102, %105 : vector<8x32xf32>
    %107 = arith.addf %0, %106 : vector<8x32xf32>
    %c2 = arith.constant 2 : index
    %c0_28 = arith.constant 0 : index
    %108 = vector.load %arg2[%c2, %c0_28] : memref<18x128xf32, #tpu.memory_space<vmem>>, vector<1x128xf32>
    %109 = vector.extract_strided_slice %108 {offsets = [0, 0], sizes = [1, 32], strides = [1, 1]} : vector<1x128xf32> to vector<1x32xf32>
    %c3 = arith.constant 3 : index
    %c0_29 = arith.constant 0 : index
    %110 = vector.load %arg2[%c3, %c0_29] : memref<18x128xf32, #tpu.memory_space<vmem>>, vector<1x128xf32>
    %111 = vector.extract_strided_slice %110 {offsets = [0, 0], sizes = [1, 32], strides = [1, 1]} : vector<1x128xf32> to vector<1x32xf32>
    %cst_30 = arith.constant dense<0.000000e+00> : vector<8xf32>
    %112 = vector.multi_reduction <add>, %107, %cst_30 [1] : vector<8x32xf32> to vector<8xf32>
    %113 = vector.shape_cast %112 : vector<8xf32> to vector<8x1xf32>
    %cst_31 = arith.constant 3.200000e+01 : f32
    %114 = vector.broadcast %cst_31 : f32 to vector<8x1xf32>
    %115 = arith.divf %113, %114 : vector<8x1xf32>
    %116 = vector.broadcast %115 : vector<8x1xf32> to vector<8x32xf32>
    %117 = arith.subf %107, %116 : vector<8x32xf32>
    %118 = arith.mulf %117, %117 : vector<8x32xf32>
    %cst_32 = arith.constant dense<0.000000e+00> : vector<8xf32>
    %119 = vector.multi_reduction <add>, %118, %cst_32 [1] : vector<8x32xf32> to vector<8xf32>
    %120 = vector.shape_cast %119 : vector<8xf32> to vector<8x1xf32>
    %cst_33 = arith.constant 3.200000e+01 : f32
    %121 = vector.broadcast %cst_33 : f32 to vector<8x1xf32>
    %122 = arith.divf %120, %121 : vector<8x1xf32>
    %123 = vector.broadcast %115 : vector<8x1xf32> to vector<8x32xf32>
    %124 = arith.subf %107, %123 : vector<8x32xf32>
    %cst_34 = arith.constant 9.99999974E-6 : f32
    %125 = vector.broadcast %cst_34 : f32 to vector<8x1xf32>
    %126 = arith.addf %122, %125 : vector<8x1xf32>
    %127 = math.rsqrt %126 : vector<8x1xf32>
    %128 = vector.broadcast %127 : vector<8x1xf32> to vector<8x32xf32>
    %129 = arith.mulf %124, %128 : vector<8x32xf32>
    %130 = vector.broadcast %109 : vector<1x32xf32> to vector<8x32xf32>
    %131 = arith.mulf %129, %130 : vector<8x32xf32>
    %132 = vector.broadcast %111 : vector<1x32xf32> to vector<8x32xf32>
    %133 = arith.addf %131, %132 : vector<8x32xf32>
    %134 = arith.truncf %133 : vector<8x32xf32> to vector<8x32xbf16>
    %c0_35 = arith.constant 0 : index
    %c0_36 = arith.constant 0 : index
    %c0_37 = arith.constant 0 : index
    %135 = vector.load %arg5[%c0_35, %c0_36, %c0_37] : memref<2x32x128xbf16, #tpu.memory_space<vmem>>, vector<1x32x128xbf16>
    %136 = vector.shape_cast %135 : vector<1x32x128xbf16> to vector<32x128xbf16>
    %cst_38 = arith.constant dense<0.000000e+00> : vector<8x128xf32>
    %137 = tpu.matmul %134, %136, %cst_38 {dimension_numbers = #tpu.dot_dimension_numbers<[1], [0], [0], [1], [0, 0, 1, 1], [], []>} : vector<8x32xbf16>, vector<32x128xbf16>, vector<8x128xf32> -> vector<8x128xf32>
    %c6 = arith.constant 6 : index
    %c0_39 = arith.constant 0 : index
    %138 = vector.load %arg2[%c6, %c0_39] : memref<18x128xf32, #tpu.memory_space<vmem>>, vector<1x128xf32>
    %139 = vector.broadcast %138 : vector<1x128xf32> to vector<8x128xf32>
    %140 = arith.addf %137, %139 : vector<8x128xf32>
    %cst_40 = arith.constant 5.000000e-01 : f32
    %141 = vector.broadcast %cst_40 : f32 to vector<8x128xf32>
    %142 = arith.mulf %141, %140 : vector<8x128xf32>
    %cst_41 = arith.constant 4.471500e-02 : f32
    %143 = vector.broadcast %cst_41 : f32 to vector<8x128xf32>
    %144 = arith.mulf %143, %140 : vector<8x128xf32>
    %145 = arith.mulf %144, %140 : vector<8x128xf32>
    %146 = arith.mulf %145, %140 : vector<8x128xf32>
    %147 = arith.addf %140, %146 : vector<8x128xf32>
    %cst_42 = arith.constant 0.797884583 : f32
    %148 = vector.broadcast %cst_42 : f32 to vector<8x128xf32>
    %149 = arith.mulf %148, %147 : vector<8x128xf32>
    %150 = math.tanh %149 : vector<8x128xf32>
    %cst_43 = arith.constant 1.000000e+00 : f32
    %151 = vector.broadcast %cst_43 : f32 to vector<8x128xf32>
    %152 = arith.addf %151, %150 : vector<8x128xf32>
    %153 = arith.mulf %142, %152 : vector<8x128xf32>
    %154 = arith.truncf %153 : vector<8x128xf32> to vector<8x128xbf16>
    %c0_44 = arith.constant 0 : index
    %c0_45 = arith.constant 0 : index
    %c0_46 = arith.constant 0 : index
    %155 = vector.load %arg6[%c0_44, %c0_45, %c0_46] : memref<2x128x32xbf16, #tpu.memory_space<vmem>>, vector<1x128x32xbf16>
    %156 = vector.shape_cast %155 : vector<1x128x32xbf16> to vector<128x32xbf16>
    %cst_47 = arith.constant dense<0.000000e+00> : vector<8x32xf32>
    %157 = tpu.matmul %154, %156, %cst_47 {dimension_numbers = #tpu.dot_dimension_numbers<[1], [0], [0], [1], [0, 0, 1, 1], [], []>} : vector<8x128xbf16>, vector<128x32xbf16>, vector<8x32xf32> -> vector<8x32xf32>
    %158 = arith.addf %107, %157 : vector<8x32xf32>
    %c7 = arith.constant 7 : index
    %c0_48 = arith.constant 0 : index
    %159 = vector.load %arg2[%c7, %c0_48] : memref<18x128xf32, #tpu.memory_space<vmem>>, vector<1x128xf32>
    %160 = vector.extract_strided_slice %159 {offsets = [0, 0], sizes = [1, 32], strides = [1, 1]} : vector<1x128xf32> to vector<1x32xf32>
    %161 = vector.broadcast %160 : vector<1x32xf32> to vector<8x32xf32>
    %162 = arith.addf %158, %161 : vector<8x32xf32>
    %c8 = arith.constant 8 : index
    %c0_49 = arith.constant 0 : index
    %163 = vector.load %arg2[%c8, %c0_49] : memref<18x128xf32, #tpu.memory_space<vmem>>, vector<1x128xf32>
    %164 = vector.extract_strided_slice %163 {offsets = [0, 0], sizes = [1, 32], strides = [1, 1]} : vector<1x128xf32> to vector<1x32xf32>
    %c9 = arith.constant 9 : index
    %c0_50 = arith.constant 0 : index
    %165 = vector.load %arg2[%c9, %c0_50] : memref<18x128xf32, #tpu.memory_space<vmem>>, vector<1x128xf32>
    %166 = vector.extract_strided_slice %165 {offsets = [0, 0], sizes = [1, 32], strides = [1, 1]} : vector<1x128xf32> to vector<1x32xf32>
    %cst_51 = arith.constant dense<0.000000e+00> : vector<8xf32>
    %167 = vector.multi_reduction <add>, %162, %cst_51 [1] : vector<8x32xf32> to vector<8xf32>
    %168 = vector.shape_cast %167 : vector<8xf32> to vector<8x1xf32>
    %cst_52 = arith.constant 3.200000e+01 : f32
    %169 = vector.broadcast %cst_52 : f32 to vector<8x1xf32>
    %170 = arith.divf %168, %169 : vector<8x1xf32>
    %171 = vector.broadcast %170 : vector<8x1xf32> to vector<8x32xf32>
    %172 = arith.subf %162, %171 : vector<8x32xf32>
    %173 = arith.mulf %172, %172 : vector<8x32xf32>
    %cst_53 = arith.constant dense<0.000000e+00> : vector<8xf32>
    %174 = vector.multi_reduction <add>, %173, %cst_53 [1] : vector<8x32xf32> to vector<8xf32>
    %175 = vector.shape_cast %174 : vector<8xf32> to vector<8x1xf32>
    %cst_54 = arith.constant 3.200000e+01 : f32
    %176 = vector.broadcast %cst_54 : f32 to vector<8x1xf32>
    %177 = arith.divf %175, %176 : vector<8x1xf32>
    %178 = vector.broadcast %170 : vector<8x1xf32> to vector<8x32xf32>
    %179 = arith.subf %162, %178 : vector<8x32xf32>
    %cst_55 = arith.constant 9.99999974E-6 : f32
    %180 = vector.broadcast %cst_55 : f32 to vector<8x1xf32>
    %181 = arith.addf %177, %180 : vector<8x1xf32>
    %182 = math.rsqrt %181 : vector<8x1xf32>
    %183 = vector.broadcast %182 : vector<8x1xf32> to vector<8x32xf32>
    %184 = arith.mulf %179, %183 : vector<8x32xf32>
    %185 = vector.broadcast %164 : vector<1x32xf32> to vector<8x32xf32>
    %186 = arith.mulf %184, %185 : vector<8x32xf32>
    %187 = vector.broadcast %166 : vector<1x32xf32> to vector<8x32xf32>
    %188 = arith.addf %186, %187 : vector<8x32xf32>
    %189 = arith.truncf %188 : vector<8x32xf32> to vector<8x32xbf16>
    %c1_56 = arith.constant 1 : index
    %c0_57 = arith.constant 0 : index
    %c0_58 = arith.constant 0 : index
    %190 = vector.load %arg3[%c1_56, %c0_57, %c0_58] : memref<2x32x48xbf16, #tpu.memory_space<vmem>>, vector<1x32x48xbf16>
    %191 = vector.shape_cast %190 : vector<1x32x48xbf16> to vector<32x48xbf16>
    %cst_59 = arith.constant dense<0.000000e+00> : vector<8x48xf32>
    %192 = tpu.matmul %189, %191, %cst_59 {dimension_numbers = #tpu.dot_dimension_numbers<[1], [0], [0], [1], [0, 0, 1, 1], [], []>} : vector<8x32xbf16>, vector<32x48xbf16>, vector<8x48xf32> -> vector<8x48xf32>
    %c12 = arith.constant 12 : index
    %c0_60 = arith.constant 0 : index
    %193 = vector.load %arg2[%c12, %c0_60] : memref<18x128xf32, #tpu.memory_space<vmem>>, vector<1x128xf32>
    %194 = vector.extract_strided_slice %193 {offsets = [0, 0], sizes = [1, 48], strides = [1, 1]} : vector<1x128xf32> to vector<1x48xf32>
    %195 = vector.broadcast %194 : vector<1x48xf32> to vector<8x48xf32>
    %196 = arith.addf %192, %195 : vector<8x48xf32>
    %197 = vector.extract_strided_slice %196 {offsets = [0, 0], sizes = [8, 32], strides = [1, 1]} : vector<8x48xf32> to vector<8x32xf32>
    %198 = vector.extract_strided_slice %196 {offsets = [0, 32], sizes = [8, 8], strides = [1, 1]} : vector<8x48xf32> to vector<8x8xf32>
    %199 = vector.shape_cast %198 : vector<8x8xf32> to vector<1x8x8xf32>
    %200 = vector.extract_strided_slice %196 {offsets = [0, 40], sizes = [8, 8], strides = [1, 1]} : vector<8x48xf32> to vector<8x8xf32>
    %201 = vector.shape_cast %200 : vector<8x8xf32> to vector<1x8x8xf32>
    %202 = vector.extract_strided_slice %197 {offsets = [0, 0], sizes = [8, 8], strides = [1, 1]} : vector<8x32xf32> to vector<8x8xf32>
    %203 = vector.shape_cast %202 : vector<8x8xf32> to vector<1x8x8xf32>
    %204 = vector.extract_strided_slice %197 {offsets = [0, 8], sizes = [8, 8], strides = [1, 1]} : vector<8x32xf32> to vector<8x8xf32>
    %205 = vector.shape_cast %204 : vector<8x8xf32> to vector<1x8x8xf32>
    %206 = vector.extract_strided_slice %197 {offsets = [0, 16], sizes = [8, 8], strides = [1, 1]} : vector<8x32xf32> to vector<8x8xf32>
    %207 = vector.shape_cast %206 : vector<8x8xf32> to vector<1x8x8xf32>
    %208 = vector.extract_strided_slice %197 {offsets = [0, 24], sizes = [8, 8], strides = [1, 1]} : vector<8x32xf32> to vector<8x8xf32>
    %209 = vector.shape_cast %208 : vector<8x8xf32> to vector<1x8x8xf32>
    %210 = tpu.concatenate %203, %205, %207, %209 in 1 : vector<1x8x8xf32>, vector<1x8x8xf32>, vector<1x8x8xf32>, vector<1x8x8xf32> -> vector<1x32x8xf32>
    %211 = arith.truncf %210 : vector<1x32x8xf32> to vector<1x32x8xbf16>
    %212 = arith.truncf %199 : vector<1x8x8xf32> to vector<1x8x8xbf16>
    "tpu.trace_start"() <{level = 10 : i32, message = "bnd,bkd->bnk"}> : () -> ()
    %cst_61 = arith.constant dense<0.000000e+00> : vector<1x32x8xf32>
    %213 = tpu.matmul %211, %212, %cst_61 {dimension_numbers = #tpu.dot_dimension_numbers<[2], [2], [1], [1], [0, 0, 0, 1, 1, 1], [0], [0]>} : vector<1x32x8xbf16>, vector<1x8x8xbf16>, vector<1x32x8xf32> -> vector<1x32x8xf32>
    "tpu.trace_stop"() : () -> ()
    %cst_62 = arith.constant 0.353553385 : f32
    %214 = vector.broadcast %cst_62 : f32 to vector<1x32x8xf32>
    %215 = arith.mulf %213, %214 : vector<1x32x8xf32>
    %216 = arith.addf %215, %22 : vector<1x32x8xf32>
    %cst_63 = arith.constant dense<0xFF800000> : vector<1x32xf32>
    %217 = vector.multi_reduction <maximumf>, %216, %cst_63 [2] : vector<1x32x8xf32> to vector<1x32xf32>
    %218 = vector.shape_cast %217 : vector<1x32xf32> to vector<1x32x1xf32>
    %219 = vector.broadcast %218 : vector<1x32x1xf32> to vector<1x32x8xf32>
    %220 = arith.subf %216, %219 : vector<1x32x8xf32>
    %221 = math.exp %220 : vector<1x32x8xf32>
    %cst_64 = arith.constant dense<0.000000e+00> : vector<1x32xf32>
    %222 = vector.multi_reduction <add>, %221, %cst_64 [2] : vector<1x32x8xf32> to vector<1x32xf32>
    %223 = vector.shape_cast %222 : vector<1x32xf32> to vector<1x32x1xf32>
    %224 = tpu.reciprocal %223 {approx = true} : vector<1x32x1xf32> -> vector<1x32x1xf32>
    %225 = vector.broadcast %224 : vector<1x32x1xf32> to vector<1x32x8xf32>
    %226 = arith.mulf %221, %225 : vector<1x32x8xf32>
    %227 = arith.truncf %226 : vector<1x32x8xf32> to vector<1x32x8xbf16>
    %228 = arith.truncf %201 : vector<1x8x8xf32> to vector<1x8x8xbf16>
    "tpu.trace_start"() <{level = 10 : i32, message = "bnk,bkd->bnd"}> : () -> ()
    %cst_65 = arith.constant dense<0.000000e+00> : vector<1x32x8xf32>
    %229 = tpu.matmul %227, %228, %cst_65 {dimension_numbers = #tpu.dot_dimension_numbers<[2], [1], [1], [2], [0, 0, 0, 1, 1, 2], [0], [0]>} : vector<1x32x8xbf16>, vector<1x8x8xbf16>, vector<1x32x8xf32> -> vector<1x32x8xf32>
    "tpu.trace_stop"() : () -> ()
    %230 = vector.extract_strided_slice %229 {offsets = [0, 0, 0], sizes = [1, 8, 8], strides = [1, 1, 1]} : vector<1x32x8xf32> to vector<1x8x8xf32>
    %231 = vector.shape_cast %230 : vector<1x8x8xf32> to vector<8x8xf32>
    %232 = vector.extract_strided_slice %229 {offsets = [0, 8, 0], sizes = [1, 8, 8], strides = [1, 1, 1]} : vector<1x32x8xf32> to vector<1x8x8xf32>
    %233 = vector.shape_cast %232 : vector<1x8x8xf32> to vector<8x8xf32>
    %234 = vector.extract_strided_slice %229 {offsets = [0, 16, 0], sizes = [1, 8, 8], strides = [1, 1, 1]} : vector<1x32x8xf32> to vector<1x8x8xf32>
    %235 = vector.shape_cast %234 : vector<1x8x8xf32> to vector<8x8xf32>
    %236 = vector.extract_strided_slice %229 {offsets = [0, 24, 0], sizes = [1, 8, 8], strides = [1, 1, 1]} : vector<1x32x8xf32> to vector<1x8x8xf32>
    %237 = vector.shape_cast %236 : vector<1x8x8xf32> to vector<8x8xf32>
    %238 = tpu.concatenate %231, %233, %235, %237 in 1 : vector<8x8xf32>, vector<8x8xf32>, vector<8x8xf32>, vector<8x8xf32> -> vector<8x32xf32>
    %239 = arith.truncf %238 : vector<8x32xf32> to vector<8x32xbf16>
    %c1_66 = arith.constant 1 : index
    %c0_67 = arith.constant 0 : index
    %c0_68 = arith.constant 0 : index
    %240 = vector.load %arg4[%c1_66, %c0_67, %c0_68] : memref<2x32x32xbf16, #tpu.memory_space<vmem>>, vector<1x32x32xbf16>
    %241 = vector.shape_cast %240 : vector<1x32x32xbf16> to vector<32x32xbf16>
    %cst_69 = arith.constant dense<0.000000e+00> : vector<8x32xf32>
    %242 = tpu.matmul %239, %241, %cst_69 {dimension_numbers = #tpu.dot_dimension_numbers<[1], [0], [0], [1], [0, 0, 1, 1], [], []>} : vector<8x32xbf16>, vector<32x32xbf16>, vector<8x32xf32> -> vector<8x32xf32>
    %c13 = arith.constant 13 : index
    %c0_70 = arith.constant 0 : index
    %243 = vector.load %arg2[%c13, %c0_70] : memref<18x128xf32, #tpu.memory_space<vmem>>, vector<1x128xf32>
    %244 = vector.extract_strided_slice %243 {offsets = [0, 0], sizes = [1, 32], strides = [1, 1]} : vector<1x128xf32> to vector<1x32xf32>
    %245 = vector.broadcast %244 : vector<1x32xf32> to vector<8x32xf32>
    %246 = arith.addf %242, %245 : vector<8x32xf32>
    %247 = arith.addf %162, %246 : vector<8x32xf32>
    %c10 = arith.constant 10 : index
    %c0_71 = arith.constant 0 : index
    %248 = vector.load %arg2[%c10, %c0_71] : memref<18x128xf32, #tpu.memory_space<vmem>>, vector<1x128xf32>
    %249 = vector.extract_strided_slice %248 {offsets = [0, 0], sizes = [1, 32], strides = [1, 1]} : vector<1x128xf32> to vector<1x32xf32>
    %c11 = arith.constant 11 : index
    %c0_72 = arith.constant 0 : index
    %250 = vector.load %arg2[%c11, %c0_72] : memref<18x128xf32, #tpu.memory_space<vmem>>, vector<1x128xf32>
    %251 = vector.extract_strided_slice %250 {offsets = [0, 0], sizes = [1, 32], strides = [1, 1]} : vector<1x128xf32> to vector<1x32xf32>
    %cst_73 = arith.constant dense<0.000000e+00> : vector<8xf32>
    %252 = vector.multi_reduction <add>, %247, %cst_73 [1] : vector<8x32xf32> to vector<8xf32>
    %253 = vector.shape_cast %252 : vector<8xf32> to vector<8x1xf32>
    %cst_74 = arith.constant 3.200000e+01 : f32
    %254 = vector.broadcast %cst_74 : f32 to vector<8x1xf32>
    %255 = arith.divf %253, %254 : vector<8x1xf32>
    %256 = vector.broadcast %255 : vector<8x1xf32> to vector<8x32xf32>
    %257 = arith.subf %247, %256 : vector<8x32xf32>
    %258 = arith.mulf %257, %257 : vector<8x32xf32>
    %cst_75 = arith.constant dense<0.000000e+00> : vector<8xf32>
    %259 = vector.multi_reduction <add>, %258, %cst_75 [1] : vector<8x32xf32> to vector<8xf32>
    %260 = vector.shape_cast %259 : vector<8xf32> to vector<8x1xf32>
    %cst_76 = arith.constant 3.200000e+01 : f32
    %261 = vector.broadcast %cst_76 : f32 to vector<8x1xf32>
    %262 = arith.divf %260, %261 : vector<8x1xf32>
    %263 = vector.broadcast %255 : vector<8x1xf32> to vector<8x32xf32>
    %264 = arith.subf %247, %263 : vector<8x32xf32>
    %cst_77 = arith.constant 9.99999974E-6 : f32
    %265 = vector.broadcast %cst_77 : f32 to vector<8x1xf32>
    %266 = arith.addf %262, %265 : vector<8x1xf32>
    %267 = math.rsqrt %266 : vector<8x1xf32>
    %268 = vector.broadcast %267 : vector<8x1xf32> to vector<8x32xf32>
    %269 = arith.mulf %264, %268 : vector<8x32xf32>
    %270 = vector.broadcast %249 : vector<1x32xf32> to vector<8x32xf32>
    %271 = arith.mulf %269, %270 : vector<8x32xf32>
    %272 = vector.broadcast %251 : vector<1x32xf32> to vector<8x32xf32>
    %273 = arith.addf %271, %272 : vector<8x32xf32>
    %274 = arith.truncf %273 : vector<8x32xf32> to vector<8x32xbf16>
    %c1_78 = arith.constant 1 : index
    %c0_79 = arith.constant 0 : index
    %c0_80 = arith.constant 0 : index
    %275 = vector.load %arg5[%c1_78, %c0_79, %c0_80] : memref<2x32x128xbf16, #tpu.memory_space<vmem>>, vector<1x32x128xbf16>
    %276 = vector.shape_cast %275 : vector<1x32x128xbf16> to vector<32x128xbf16>
    %cst_81 = arith.constant dense<0.000000e+00> : vector<8x128xf32>
    %277 = tpu.matmul %274, %276, %cst_81 {dimension_numbers = #tpu.dot_dimension_numbers<[1], [0], [0], [1], [0, 0, 1, 1], [], []>} : vector<8x32xbf16>, vector<32x128xbf16>, vector<8x128xf32> -> vector<8x128xf32>
    %c14 = arith.constant 14 : index
    %c0_82 = arith.constant 0 : index
    %278 = vector.load %arg2[%c14, %c0_82] : memref<18x128xf32, #tpu.memory_space<vmem>>, vector<1x128xf32>
    %279 = vector.broadcast %278 : vector<1x128xf32> to vector<8x128xf32>
    %280 = arith.addf %277, %279 : vector<8x128xf32>
    %cst_83 = arith.constant 5.000000e-01 : f32
    %281 = vector.broadcast %cst_83 : f32 to vector<8x128xf32>
    %282 = arith.mulf %281, %280 : vector<8x128xf32>
    %cst_84 = arith.constant 4.471500e-02 : f32
    %283 = vector.broadcast %cst_84 : f32 to vector<8x128xf32>
    %284 = arith.mulf %283, %280 : vector<8x128xf32>
    %285 = arith.mulf %284, %280 : vector<8x128xf32>
    %286 = arith.mulf %285, %280 : vector<8x128xf32>
    %287 = arith.addf %280, %286 : vector<8x128xf32>
    %cst_85 = arith.constant 0.797884583 : f32
    %288 = vector.broadcast %cst_85 : f32 to vector<8x128xf32>
    %289 = arith.mulf %288, %287 : vector<8x128xf32>
    %290 = math.tanh %289 : vector<8x128xf32>
    %cst_86 = arith.constant 1.000000e+00 : f32
    %291 = vector.broadcast %cst_86 : f32 to vector<8x128xf32>
    %292 = arith.addf %291, %290 : vector<8x128xf32>
    %293 = arith.mulf %282, %292 : vector<8x128xf32>
    %294 = arith.truncf %293 : vector<8x128xf32> to vector<8x128xbf16>
    %c1_87 = arith.constant 1 : index
    %c0_88 = arith.constant 0 : index
    %c0_89 = arith.constant 0 : index
    %295 = vector.load %arg6[%c1_87, %c0_88, %c0_89] : memref<2x128x32xbf16, #tpu.memory_space<vmem>>, vector<1x128x32xbf16>
    %296 = vector.shape_cast %295 : vector<1x128x32xbf16> to vector<128x32xbf16>
    %cst_90 = arith.constant dense<0.000000e+00> : vector<8x32xf32>
    %297 = tpu.matmul %294, %296, %cst_90 {dimension_numbers = #tpu.dot_dimension_numbers<[1], [0], [0], [1], [0, 0, 1, 1], [], []>} : vector<8x128xbf16>, vector<128x32xbf16>, vector<8x32xf32> -> vector<8x32xf32>
    %298 = arith.addf %247, %297 : vector<8x32xf32>
    %c15 = arith.constant 15 : index
    %c0_91 = arith.constant 0 : index
    %299 = vector.load %arg2[%c15, %c0_91] : memref<18x128xf32, #tpu.memory_space<vmem>>, vector<1x128xf32>
    %300 = vector.extract_strided_slice %299 {offsets = [0, 0], sizes = [1, 32], strides = [1, 1]} : vector<1x128xf32> to vector<1x32xf32>
    %301 = vector.broadcast %300 : vector<1x32xf32> to vector<8x32xf32>
    %302 = arith.addf %298, %301 : vector<8x32xf32>
    %c16 = arith.constant 16 : index
    %c0_92 = arith.constant 0 : index
    %303 = vector.load %arg2[%c16, %c0_92] : memref<18x128xf32, #tpu.memory_space<vmem>>, vector<1x128xf32>
    %304 = vector.extract_strided_slice %303 {offsets = [0, 0], sizes = [1, 32], strides = [1, 1]} : vector<1x128xf32> to vector<1x32xf32>
    %c17 = arith.constant 17 : index
    %c0_93 = arith.constant 0 : index
    %305 = vector.load %arg2[%c17, %c0_93] : memref<18x128xf32, #tpu.memory_space<vmem>>, vector<1x128xf32>
    %306 = vector.extract_strided_slice %305 {offsets = [0, 0], sizes = [1, 32], strides = [1, 1]} : vector<1x128xf32> to vector<1x32xf32>
    %cst_94 = arith.constant dense<0.000000e+00> : vector<8xf32>
    %307 = vector.multi_reduction <add>, %302, %cst_94 [1] : vector<8x32xf32> to vector<8xf32>
    %308 = vector.shape_cast %307 : vector<8xf32> to vector<8x1xf32>
    %cst_95 = arith.constant 3.200000e+01 : f32
    %309 = vector.broadcast %cst_95 : f32 to vector<8x1xf32>
    %310 = arith.divf %308, %309 : vector<8x1xf32>
    %311 = vector.broadcast %310 : vector<8x1xf32> to vector<8x32xf32>
    %312 = arith.subf %302, %311 : vector<8x32xf32>
    %313 = arith.mulf %312, %312 : vector<8x32xf32>
    %cst_96 = arith.constant dense<0.000000e+00> : vector<8xf32>
    %314 = vector.multi_reduction <add>, %313, %cst_96 [1] : vector<8x32xf32> to vector<8xf32>
    %315 = vector.shape_cast %314 : vector<8xf32> to vector<8x1xf32>
    %cst_97 = arith.constant 3.200000e+01 : f32
    %316 = vector.broadcast %cst_97 : f32 to vector<8x1xf32>
    %317 = arith.divf %315, %316 : vector<8x1xf32>
    %318 = vector.broadcast %310 : vector<8x1xf32> to vector<8x32xf32>
    %319 = arith.subf %302, %318 : vector<8x32xf32>
    %cst_98 = arith.constant 9.99999974E-6 : f32
    %320 = vector.broadcast %cst_98 : f32 to vector<8x1xf32>
    %321 = arith.addf %317, %320 : vector<8x1xf32>
    %322 = math.rsqrt %321 : vector<8x1xf32>
    %323 = vector.broadcast %322 : vector<8x1xf32> to vector<8x32xf32>
    %324 = arith.mulf %319, %323 : vector<8x32xf32>
    %325 = vector.broadcast %304 : vector<1x32xf32> to vector<8x32xf32>
    %326 = arith.mulf %324, %325 : vector<8x32xf32>
    %327 = vector.broadcast %306 : vector<1x32xf32> to vector<8x32xf32>
    %328 = arith.addf %326, %327 : vector<8x32xf32>
    %c0_99 = arith.constant 0 : index
    %c0_100 = arith.constant 0 : index
    %329 = vector.load %arg7[%c0_99, %c0_100] : memref<8x32xf32, #tpu.memory_space<vmem>>, vector<8x32xf32>
    tpu.vector_store %arg7[%c0_99, %c0_100], %328 {strides = array<i32>} : memref<8x32xf32, #tpu.memory_space<vmem>>, vector<8x32xf32>,
    return
  }
  func.func @transform_0(%arg0: i32) -> (i32, i32) {
    %c0_i32 = arith.constant 0 : i32
    %c0_i32_0 = arith.constant 0 : i32
    return %arg0, %c0_i32 : i32, i32
  }
  func.func @transform_1(%arg0: i32) -> (i32, i32) {
    %c0_i32 = arith.constant 0 : i32
    %c0_i32_0 = arith.constant 0 : i32
    %c0_i32_1 = arith.constant 0 : i32
    return %c0_i32, %c0_i32_0 : i32, i32
  }
  func.func @transform_2(%arg0: i32) -> (i32, i32, i32) {
    %c0_i32 = arith.constant 0 : i32
    %c0_i32_0 = arith.constant 0 : i32
    %c0_i32_1 = arith.constant 0 : i32
    %c0_i32_2 = arith.constant 0 : i32
    return %c0_i32, %c0_i32_0, %c0_i32_1 : i32, i32, i32
  }
  func.func @transform_3(%arg0: i32) -> (i32, i32, i32) {
    %c0_i32 = arith.constant 0 : i32
    %c0_i32_0 = arith.constant 0 : i32
    %c0_i32_1 = arith.constant 0 : i32
    %c0_i32_2 = arith.constant 0 : i32
    return %c0_i32, %c0_i32_0, %c0_i32_1 : i32, i32, i32
  }
  func.func @transform_4(%arg0: i32) -> (i32, i32, i32) {
    %c0_i32 = arith.constant 0 : i32
    %c0_i32_0 = arith.constant 0 : i32
    %c0_i32_1 = arith.constant 0 : i32
    %c0_i32_2 = arith.constant 0 : i32
    return %c0_i32, %c0_i32_0, %c0_i32_1 : i32, i32, i32
  }
  func.func @transform_5(%arg0: i32) -> (i32, i32, i32) {
    %c0_i32 = arith.constant 0 : i32
    %c0_i32_0 = arith.constant 0 : i32
    %c0_i32_1 = arith.constant 0 : i32
    %c0_i32_2 = arith.constant 0 : i32
    return %c0_i32, %c0_i32_0, %c0_i32_1 : i32, i32, i32
  }
  func.func @transform_6(%arg0: i32) -> (i32, i32) {
    %c0_i32 = arith.constant 0 : i32
    %c0_i32_0 = arith.constant 0 : i32
    return %arg0, %c0_i32 : i32, i32
  }
}

</mosaic_0001>

<bundles_post_ra>
// kernel: forward.1
= control target key start
LH: loop header
LB: loop body
LE: loop exit
PB: predicated region body
PF: predicated region fallthrough
CT: control target
= control target key end

     0   :  { %11 = vsyncpa [#allocation3], 0  ;;  %s2451_s0 = inlined_call_operand.vmem [shape: f32[16,32], index: 0, kind: input, shape index: {}]   ;;  %s2452_s1 = inlined_call_operand.vmem [shape: f32[18,128], index: 1, kind: input, shape index: {}]   ;;  %s2453_s2 = inlined_call_operand.vmem [shape: bf16[2,32,48], index: 2, kind: input, shape index: {}]   ;;  %s2454_s3 = inlined_call_operand.vmem [shape: bf16[2,32,32], index: 3, kind: input, shape index: {}]   ;;  %s2455_s4 = inlined_call_operand.vmem [shape: bf16[2,32,128], index: 4, kind: input, shape index: {}]   ;;  %s2456_s5 = inlined_call_operand.vmem [shape: bf16[2,128,32], index: 5, kind: input, shape index: {}]   ;;  %s2457_s6 = inlined_call_operand.hbm [shape: f32[16,32], index: 6, kind: output, shape index: {}]  }
   0x1   :  { %13 = vsyncpa [#allocation3 + $0x1], 0  ;;  %s2058_s21 = smov 0   ;;  %s2060_s22 = smov 0  }
   0x2   :  { %s2062_s23 = smov 0   ;;  %s2064_s24 = smov 0  }
   0x3 LB: > { %s2079_s25 = sadd.s32 4294967295, %s2009_s24   ;;  %s1561_s26 = sadd.s32 4294967294, %s2009_s24   ;;  %s2009_s24 = sphi %s2064_s24, %s2465_s24   ;;  %s2005_s23 = sphi %s2062_s23, %s2464_s23   ;;  %s2001_s22 = sphi %s2060_s22, %s2463_s22   ;;  %s1997_s21 = sphi %s2058_s21, %s2462_s21  }
   0x4   : > { %s2083_s27 = sadd.s32 1, %s2009_s24   ;;  %s157_s28 = sadd.s32 1, %s2005_s23 }
   0x5   : > { %s154_s29 = ssub.s32 %s2009_s24, %s2083_s27  ;;  %p167_p0 = scmp.ne.s32.totalorder %s2005_s23, %s2001_s22 }
   0x6   : > { %p155_p1 = scmp.eq.s32.totalorder %s154_s29, 0  ;;  %p168_p2 = scmp.eq.s32.totalorder %s2079_s25, 1 }
   0x7   : > { %p173_p3 = scmp.ne.s32.totalorder %s2001_s22, %s1997_s21  ;;  %p174_p4 = scmp.eq.s32.totalorder %s1561_s26, 1 }
   0x8   : > { %s2094_s30 = scalar_select %p155_p1, %s2005_s23, %s157_s28  }
   0x9   : > { %p2096_p5 = por %p168_p2, %p167_p0  ;;  %p2100_p6 = por %p174_p4, %p173_p3 }
   0xa   : > { %p1564_p7 = scmp.ge.s32.totalorder %s2009_s24, 1  ;;  %p214_p8 = scmp.lt.s32.totalorder %s2009_s24, 3 }
   0xc   : > { %p215_p9 = pnand %p1564_p7, %p214_p8 }
   0xd   : > { %p243_p10 = scmp.lt.s32.totalorder (!%p215_p9), %s2079_s25, 1  ;;  %vm314_vm0 = vcmask (!%p215_p9), 261120   ;;  %v1873_v7 = vld [vmem:[%s2453_s2] sm:$0xff] (!%p215_p9)   ;;  %v2011_v8 = vmov (!%p215_p9), 0.0   ;;  %vm2012_vm1 = vmmov (!%p215_p9), 0   ;;  %v1874_v9 = vld [vmem:[%s2453_s2 + $0x8] sm:$0xff] (!%p215_p9)   ;;  %v249_v34 = vlaneseq (!%p215_p9) }
   0xe   : > { %218 = sbr.rel (%p215_p9) target bundleno = 5400 (0x1518), region = 44  ;;  %1707 = vmatprep.subr.bf16.mxu1 (!%p215_p9), %v2011_v8  ;;  %1711 = vmatprep.mubr.msk.bf16.mxu1 (!%p215_p9), %vm2012_vm1, %v2011_v8  ;;  %v1567_v14 = vld [vmem:[%s2452_s1] ss:$0 sm:$0xff] (!%p215_p9)  ;;  %v1568_v16 = vld [vmem:[%s2452_s1 + $0x1] ss:$0 sm:$0xff] (!%p215_p9)  ;;  %s2015_s11 = smov (!%p215_p9), 120  }
   0xf   : > { %1708 = vmatpush3.bf16.msra.mxu1 (!%p215_p9), %v1873_v7  ;;  %1735 = vmatprep.subr.bf16.mxu0 (!%p215_p9), %v2011_v8  ;;  %v1569_v20 = vld [vmem:[%s2452_s1 + $0x4] ss:$0 sm:$0xff] (!%p215_p9)  ;;  %s2016_s12 = smov (!%p215_p9), 104   ;;  %vm420_vm2 = vcmask (!%p215_p9), 64512   ;;  %v250_v35 = vshrl.u32 (!%p215_p9), %v249_v34, 7  ;;  %v255_v38 = vand.u32 (!%p215_p9), 127, %v249_v34 }
  0x10   : > { %1709 = vmatprep.subr.bf16.mxu1 (!%p215_p9), %v2011_v8  ;;  %1739 = vmatprep.mubr.msk.bf16.mxu0 (!%p215_p9), %vm2012_vm1, %v2011_v8  ;;  %v2017_v46 = vmov (!%p215_p9), -1e+30   ;;  %vm541_vm7 = vcmask (!%p215_p9), 1043456   ;;  %s2019_s18 = smov (!%p215_p9), 24   ;;  %s2020_s19 = smov (!%p215_p9), 8   ;;  %vm607_vm8 = vcmask (!%p215_p9), 130048  }
  0x11   : > { %v251_v36 = vadd.s32 (!%p215_p9), 8, %v250_v35  ;;  %v252_v37 = vadd.s32 (!%p215_p9), 16, %v250_v35  ;;  %v260_v39 = vand.u32 (!%p215_p9), 7, %v250_v35  ;;  %v253_v42 = vadd.s32 (!%p215_p9), 24, %v250_v35  ;;  %s2458_s20 = smov (!%p215_p9), 16   ;;  %s1656_s16 = sshll.u32 (!%p215_p9), %s2079_s25, 7 }
  0x12   : > { %vm609_vm9 = vcmask (!%p215_p9), 195584  }
  0x13   : > { %1710 = vmatpush3.bf16.msra.mxu1 (!%p215_p9), %v1874_v9  ;;  %v267_v40 = vand.u32 (!%p215_p9), 7, %v251_v36  ;;  %v274_v41 = vand.u32 (!%p215_p9), 7, %v252_v37  ;;  %vm304_vm3 = vcmp.ge.s32.totalorder (!%p215_p9), %v260_v39, %v255_v38  ;;  %v281_v44 = vand.u32 (!%p215_p9), 7, %v253_v42  ;;  %v1875_v39 = vld [vmem:[%s2454_s3] sm:$0xff] (!%p215_p9)  }
  0x14   : > { %v2151_v47 = vsel (!%p215_p9), %vm304_vm3, 0.0, %v2017_v46 }
  0x15   : > { %s244_s9 = scalar_select %p243_p10, %s2079_s25, 1  ;;  %vm305_vm4 = vcmp.ge.s32.totalorder %v267_v40, %v255_v38  ;;  %vm306_vm5 = vcmp.ge.s32.totalorder %v274_v41, %v255_v38  ;;  %vm307_vm6 = vcmp.ge.s32.totalorder %v281_v44, %v255_v38  ;;  %v1876_v40 = vld [vmem:[%s2454_s3 + $0x8] sm:$0xff]  }
  0x16   : > { %v2153_v52 = vsel %vm305_vm4, 0.0, %v2017_v46  ;;  %v2155_v53 = vsel %vm306_vm5, 0.0, %v2017_v46  ;;  %v2161_v60 = vsel %vm307_vm6, 0.0, %v2017_v46  ;;  %s2022_s25 = smov [#allocation2]  }
  0x17   : > { %s1566_s10 = sshll.u32 %s244_s9, 3  ;;  %s2013_s9 = smov 112  }
  0x18   : > { %s246_s13 = scalar_lea.vmem %s2451_s0, %s1566_s10  ;;  %s2014_s10 = smov 96  }
  0x19   : > { %v2111_v0 = vld [vmem:[%s246_s13] sm:$0xff]  ;;  %s2018_s13 = smov 88  }
  0x1a   : > { %v315_v1 = vsel %vm314_vm0, %v2111_v0, 0.0 }
  0x1b   : > { %316 = vadd.xlane.f32.xlu0 %v315_v1 }
  0xa8   : > { %v317_v2 = vpop.xlane.xlu0 %316 }
  0xa9   : > { %v319_v3 = vmul.f32 0.03125, %v317_v2 }
  0xab   : > { %v320_v4 = vsub.f32 %v2111_v0, %v319_v3 }
  0xad   : > { %v321_v5 = vmul.f32 %v320_v4, %v320_v4 }
  0xaf   : > { %v322_v6 = vsel %vm314_vm0, %v321_v5, 0.0 }
  0xb0   : > { %323 = vadd.xlane.f32.xlu0 %v322_v6 }
 0x13d   : > { %v324_v10 = vpop.xlane.xlu0 %323 }
 0x13e   : > { %v325_v11 = vmul.f32 0.03125, %v324_v10 }
 0x140   : > { %v326_v12 = vadd.f32 1e-05, %v325_v11 }
 0x142   : > { %1901 = vrsqrt.f32 %v326_v12 }
 0x14c   : > { %v1902_v13 = vpop.eup %1901 }
 0x14d   : > { %v328_v15 = vmul.f32 %v1902_v13, %v320_v4 }
 0x14f   : > { %v333_v17 = vmul.f32 %v1567_v14, %v328_v15 }
 0x151   : > { %v338_v18 = vadd.f32 %v1568_v16, %v333_v17 }
 0x153   : > { %v339_v19 = vpack.c.bf16 %v338_v18, %v338_v18 }
 0x155   : > { %1712 = vmatmul.mubr.msk.bf16.vlgmr.msra.gmra.mrb[0].mxu1 %vm314_vm0, %v339_v19 }
 0x228   : > { %v398_v21 = vpop.f32.mrb[0].mxu1 }
 0x229   : > { %v399_v22 = vadd.f32 %v1569_v20, %v398_v21  ;;  %v1713_v23 = vpop.f32.mrb[1].mxu1 }
 0x22a   : > { %v401_v24 = vpop.f32.mrb[2].mxu1 }
 0x22b   : > { %408 = vrot.lane.b32.xlu0 %v399_v22, %s2013_s9  ;;  %v1714_v25 = vpop.f32.mrb[3].mxu1  ;;  %v2141_v26 = vpack.c.bf16 %v399_v22, %v399_v22 }
 0x22d   : > { %418 = vrot.lane.b32.xlu1 %v2141_v26, %s2014_s10 }
 0x231   : > { %405 = vrot.lane.b32.xlu1 %v399_v22, %s2015_s11 }
 0x235   : > { %411 = vrot.lane.b32.xlu1 %v399_v22, %s2016_s12 }
 0x29d   : > { %v409_v31 = vpop.permute.xlu0 %408 }
 0x29f   : > { %v419_v27 = vpop.permute.xlu1 %418 }
 0x2a0   : > { %v428_v28 = vsel %vm420_vm2, %v419_v27, 0  ;;  %1819 = vmatprep.subr.msk.bf16.mxu1 %vm420_vm2, %v419_v27 }
 0x2a1   : > { %1716 = vmatpush3.bf16.xpose.msra.mxu1 %v428_v28 }
 0x2a3   : > { %v406_v29 = vpop.permute.xlu1 %405 }
 0x2a4   : > { %v414_v30 = vpack.c.bf16 %v406_v29, %v399_v22 }
 0x2a6   : > { %1717 = vmatprep.mubr.msk.bf16.mxu1 %vm420_vm2, %v414_v30 }
 0x2a7   : > { %v412_v32 = vpop.permute.xlu1 %411 }
 0x2a8   : > { %v415_v33 = vpack.c.bf16 %v412_v32, %v409_v31 }
 0x2aa   : > { %1718 = vmatmul.mubr.msk.bf16.vlgmr.msra.gmra.mrb[4].mxu1 %vm420_vm2, %v415_v33 }
 0x37d   : > { %v1719_v43 = vpop.f32.mrb[4].mxu1 }
 0x37e   : > { %v464_v45 = vpop.f32.mrb[5].mxu1  ;;  %v481_v48 = vmul.f32 0.35355338, %v1719_v43 }
 0x37f   : > { %v479_v49 = vmul.f32 0.35355338, %v464_v45  ;;  %v1720_v50 = vpop.f32.mrb[6].mxu1 }
 0x380   : > { %v467_v51 = vpop.f32.mrb[7].mxu1  ;;  %v482_v56 = vmul.f32 0.35355338, %v1720_v50  ;;  %v485_v59 = vadd.f32 %v481_v48, %v2155_v53 }
 0x381   : > { %v480_v54 = vmul.f32 0.35355338, %v467_v51  ;;  %v483_v55 = vadd.f32 %v479_v49, %v2151_v47 }
 0x382   : > { %v493_v62 = vsel %vm420_vm2, %v485_v59, -inf  ;;  %v486_v63 = vadd.f32 %v482_v56, %v2161_v60 }
 0x383   : > { %v487_v57 = vsel %vm420_vm2, %v483_v55, -inf  ;;  %v484_v58 = vadd.f32 %v480_v54, %v2153_v52 }
 0x384   : > { %488 = vmax.xlane.f32.xlu1 %v487_v57  ;;  %v496_v1 = vsel %vm420_vm2, %v486_v63, -inf }
 0x385   : > { %v490_v61 = vsel %vm420_vm2, %v484_v58, -inf }
 0x386   : > { %491 = vmax.xlane.f32.xlu0 %v490_v61 }
 0x388   : > { %494 = vmax.xlane.f32.xlu1 %v493_v62 }
 0x38c   : > { %497 = vmax.xlane.f32.xlu1 %v496_v1 }
 0x411   : > { %v489_v2 = vpop.xlane.xlu1 %488 }
 0x412   : > { %v499_v3 = vsub.f32 %v483_v55, %v489_v2  ;;  %v1577_v55 = vld [vmem:[%s2452_s1 + $0x5] ss:$0 sm:$0xff] }
 0x413   : > { %v492_v4 = vpop.xlane.xlu0 %491 }
 0x414   : > { %v503_v5 = vmul.f32 1.442695, %v499_v3  ;;  %v500_v6 = vsub.f32 %v484_v58, %v492_v4 }
 0x415   : > { %v495_v7 = vpop.xlane.xlu1 %494 }
 0x416   : > { %1903 = vpow2.f32 %v503_v5  ;;  %v505_v9 = vmul.f32 1.442695, %v500_v6  ;;  %v501_v10 = vsub.f32 %v485_v59, %v495_v7  ;;  %v1877_v6 = vld [vmem:[%s2455_s4] sm:$0xff]  }
 0x417   : > { %1736 = vmatpush3.bf16.msra.mxu0 %v1877_v6  ;;  %v1879_v7 = vld [vmem:[%s2456_s5] sm:$0xff]  }
 0x418   : > { %1905 = vpow2.f32 %v505_v9  ;;  %v507_v11 = vmul.f32 1.442695, %v501_v10  ;;  %1737 = vmatprep.subr.bf16.mxu0 %v2011_v8 }
 0x419   : > { %v498_v12 = vpop.xlane.xlu1 %497 }
 0x41a   : > { %1907 = vpow2.f32 %v507_v11  ;;  %v502_v13 = vsub.f32 %v486_v63, %v498_v12 }
 0x41c   : > { %v509_v14 = vmul.f32 1.442695, %v502_v13  ;;  %v1581_v13 = vld [vmem:[%s2452_s1 + $0x2] ss:$0 sm:$0xff] }
 0x41e   : > { %1909 = vpow2.f32 %v509_v14 }
 0x420   : > { %v1904_v15 = vpop.eup %1903 }
 0x421   : > { %v511_v16 = vsel %vm420_vm2, %v1904_v15, 0.0 }
 0x422   : > { %v1906_v17 = vpop.eup %1905  ;;  %512 = vadd.xlane.f32.xlu1 %v511_v16 }
 0x423   : > { %v514_v20 = vsel %vm420_vm2, %v1906_v17, 0.0 }
 0x424   : > { %v1908_v18 = vpop.eup %1907 }
 0x425   : > { %v517_v19 = vsel %vm420_vm2, %v1908_v18, 0.0 }
 0x426   : > { %518 = vadd.xlane.f32.xlu0 %v517_v19  ;;  %515 = vadd.xlane.f32.xlu1 %v514_v20  ;;  %v1880_v19 = vld [vmem:[%s2456_s5 + $0x8] sm:$0xff]   ;;  %v1881_v20 = vld [vmem:[%s2456_s5 + $0x10] sm:$0xff]  }
 0x428   : > { %v1910_v21 = vpop.eup %1909 }
 0x429   : > { %v520_v22 = vsel %vm420_vm2, %v1910_v21, 0.0 }
 0x42a   : > { %521 = vadd.xlane.f32.xlu1 %v520_v22  ;;  %v1883_v22 = vld [vmem:[%s2456_s5 + $0x20] sm:$0xff]  }
 0x43c   : > { %533 = vrot.lane.b32.xlu0 %v2141_v26, %s2018_s13 }
 0x4af   : > { %v513_v23 = vpop.xlane.xlu1 %512 }
 0x4b0   : > { %1911 = vrcp.f32 %v513_v23  ;;  %v1884_v23 = vld [vmem:[%s2456_s5 + $0x28] sm:$0xff]  }
 0x4b3   : > { %v516_v24 = vpop.xlane.xlu1 %515  ;;  %v519_v25 = vpop.xlane.xlu0 %518 }
 0x4b4   : > { %1913 = vrcp.f32 %v516_v24  ;;  %v1885_v24 = vld [vmem:[%s2456_s5 + $0x30] sm:$0xff]  }
 0x4b5   : > { %1915 = vrcp.f32 %v519_v25  ;;  %v1886_v25 = vld [vmem:[%s2456_s5 + $0x38] sm:$0xff]  }
 0x4b7   : > { %v522_v27 = vpop.xlane.xlu1 %521  ;;  %v534_v28 = vpop.permute.xlu0 %533 }
 0x4b8   : > { %1917 = vrcp.f32 %v522_v27  ;;  %v543_v29 = vsel %vm541_vm7, %v534_v28, 0  ;;  %1820 = vmatprep.subr.msk.bf16.mxu1 %vm541_vm7, %v534_v28  ;;  %v1583_v27 = vld [vmem:[%s2452_s1 + $0x6] ss:$0 sm:$0xff] }
 0x4b9   : > { %1722 = vmatpush3.bf16.msra.mxu1 %v543_v29 }
 0x4ba   : > { %1727 = vmatprep.subr.bf16.mxu1 %v2011_v8  ;;  %v1912_v30 = vpop.eup %1911 }
 0x4bb   : > { %v527_v26 = vmul.f32 %v1912_v30, %v1904_v15  ;;  %v1582_v15 = vld [vmem:[%s2452_s1 + $0x3] ss:$0 sm:$0xff] }
 0x4be   : > { %v1914_v31 = vpop.eup %1913 }
 0x4bf   : > { %v528_v32 = vmul.f32 %v1914_v31, %v1906_v17  ;;  %v1916_v33 = vpop.eup %1915 }
 0x4c0   : > { %v529_v36 = vmul.f32 %v1916_v33, %v1908_v18 }
 0x4c1   : > { %v531_v34 = vpack.c.bf16 %v528_v32, %v527_v26 }
 0x4c2   : > { %v1918_v35 = vpop.eup %1917 }
 0x4c3   : > { %v530_v37 = vmul.f32 %v1918_v35, %v1910_v21  ;;  %1723 = vmatprep.mubr.msk.bf16.mxu1 %vm420_vm2, %v531_v34  ;;  %v1882_v21 = vld [vmem:[%s2456_s5 + $0x18] sm:$0xff]  }
 0x4c5   : > { %v532_v38 = vpack.c.bf16 %v530_v37, %v529_v36 }
 0x4c7   : > { %1724 = vmatmul.mubr.msk.bf16.vlgmr.msra.gmra.mrb[8].mxu1 %vm420_vm2, %v532_v38 }
 0x4c8   : > { %1731 = vmatprep.mubr.msk.bf16.mxu1 %vm2012_vm1, %v2011_v8  ;;  %1728 = vmatpush3.bf16.msra.mxu1 %v1875_v39 }
 0x4c9   : > { %1729 = vmatprep.subr.bf16.mxu1 %v2011_v8 }
 0x4cc   : > { %1730 = vmatpush3.bf16.msra.mxu1 %v1876_v40 }
 0x4cd   : > { %1743 = vmatprep.subr.bf16.mxu1 %v2011_v8 }
 0x59a   : > { %v1725_v41 = vpop.f32.mrb[8].mxu1 }
 0x59b   : > { %v579_v42 = vpop.f32.mrb[9].mxu1 }
 0x59c   : > { %v1726_v43 = vpop.f32.mrb[10].mxu1 }
 0x59d   : > { %603 = vrot.lane.b32.xlu0 %v1726_v43, %s2019_s18  ;;  %v582_v44 = vpop.f32.mrb[11].mxu1  ;;  %v1595_v43 = vld [vmem:[%s2452_s1 + $0x7] ss:$0 sm:$0xff] }
 0x59e   : > { %595 = vrot.lane.b32.xlu1 %v582_v44, %s2020_s19 }
 0x5a2   : > { %599 = vrot.lane.b32.xlu1 %v1725_v41, %s2458_s20 }
 0x60f   : > { %v604_v49 = vpop.permute.xlu0 %603 }
 0x610   : > { %v596_v45 = vpop.permute.xlu1 %595 }
 0x611   : > { %v606_v46 = vsel %vm420_vm2, %v579_v42, %v596_v45 }
 0x614   : > { %v600_v48 = vpop.permute.xlu1 %599 }
 0x615   : > { %v608_v50 = vsel %vm607_vm8, %v606_v46, %v600_v48 }
 0x616   : > { %v610_v51 = vsel %vm609_vm9, %v608_v50, %v604_v49 }
 0x617   : > { %v611_v54 = vpack.c.bf16 %v610_v51, %v610_v51 }
 0x619   : > { %1732 = vmatmul.mubr.msk.bf16.vlgmr.msra.gmra.mrb[12].mxu1 %vm314_vm0, %v611_v54 }
 0x61a   : > { %1759 = vmatprep.mubr.msk.bf16.mxu1 %vm2012_vm1, %v2011_v8  ;;  %1744 = vmatpush3.bf16.msra.mxu1 %v1879_v7  ;;  %v1602_v7 = vld [vmem:[%s2452_s1 + $0xc] ss:$0 sm:$0xff] }
 0x61b   : > { %1745 = vmatprep.subr.bf16.mxu1 %v2011_v8 }
 0x61e   : > { %1746 = vmatpush3.bf16.msra.mxu1 %v1880_v19 }
 0x61f   : > { %1747 = vmatprep.subr.bf16.mxu1 %v2011_v8 }
 0x622   : > { %1748 = vmatpush3.bf16.msra.mxu1 %v1881_v20 }
 0x623   : > { %1749 = vmatprep.subr.bf16.mxu1 %v2011_v8 }
 0x626   : > { %1750 = vmatpush3.bf16.msra.mxu1 %v1882_v21 }
 0x627   : > { %1751 = vmatprep.subr.bf16.mxu1 %v2011_v8 }
 0x62a   : > { %1752 = vmatpush3.bf16.msra.mxu1 %v1883_v22 }
 0x62b   : > { %1753 = vmatprep.subr.bf16.mxu1 %v2011_v8 }
 0x62e   : > { %1754 = vmatpush3.bf16.msra.mxu1 %v1884_v23 }
 0x62f   : > { %1755 = vmatprep.subr.bf16.mxu1 %v2011_v8 }
 0x632   : > { %1756 = vmatpush3.bf16.msra.mxu1 %v1885_v24 }
 0x633   : > { %1757 = vmatprep.subr.bf16.mxu1 %v2011_v8 }
 0x636   : > { %1758 = vmatpush3.bf16.msra.mxu1 %v1886_v25 }
 0x637   : > { %1791 = vmatprep.subr.bf16.mxu1 %v2011_v8 }
 0x6ec   : > { %v670_v56 = vpop.f32.mrb[12].mxu1 }
 0x6ed   : > { %v671_v57 = vadd.f32 %v1577_v55, %v670_v56  ;;  %v1733_v58 = vpop.f32.mrb[13].mxu1 }
 0x6ee   : > { %v673_v59 = vpop.f32.mrb[14].mxu1  ;;  %v1887_v58 = vld [vmem:[%s2453_s2 + $0x10] sm:$0xff]  }
 0x6ef   : > { %v2201_v61 = vadd.f32 %v671_v57, %v2111_v0  ;;  %v1734_v62 = vpop.f32.mrb[15].mxu1  ;;  %v1878_v0 = vld [vmem:[%s2455_s4 + $0x8] sm:$0xff]   ;;  %v1888_v59 = vld [vmem:[%s2453_s2 + $0x18] sm:$0xff]  }
 0x6f0   : > { %1738 = vmatpush3.bf16.msra.mxu0 %v1878_v0 }
 0x6f1   : > { %v679_v63 = vsel %vm314_vm0, %v2201_v61, 0.0  ;;  %1763 = vmatprep.subr.bf16.mxu0 %v2011_v8 }
 0x6f2   : > { %680 = vadd.xlane.f32.xlu1 %v679_v63 }
 0x77f   : > { %v681_v1 = vpop.xlane.xlu1 %680 }
 0x780   : > { %v682_v2 = vmul.f32 0.03125, %v681_v1 }
 0x782   : > { %v683_v3 = vsub.f32 %v2201_v61, %v682_v2  ;;  %v1596_v2 = vld [vmem:[%s2452_s1 + $0x8] ss:$0 sm:$0xff] }
 0x784   : > { %v684_v4 = vmul.f32 %v683_v3, %v683_v3 }
 0x786   : > { %v685_v5 = vsel %vm314_vm0, %v684_v4, 0.0  ;;  %v1597_v4 = vld [vmem:[%s2452_s1 + $0x9] ss:$0 sm:$0xff] }
 0x787   : > { %686 = vadd.xlane.f32.xlu0 %v685_v5 }
 0x814   : > { %v687_v9 = vpop.xlane.xlu0 %686 }
 0x815   : > { %v688_v10 = vmul.f32 0.03125, %v687_v9 }
 0x817   : > { %v689_v11 = vadd.f32 1e-05, %v688_v10 }
 0x819   : > { %1919 = vrsqrt.f32 %v689_v11 }
 0x823   : > { %v1920_v12 = vpop.eup %1919 }
 0x824   : > { %v691_v14 = vmul.f32 %v1920_v12, %v683_v3 }
 0x826   : > { %v696_v16 = vmul.f32 %v1581_v13, %v691_v14 }
 0x828   : > { %v701_v17 = vadd.f32 %v1582_v15, %v696_v16 }
 0x82a   : > { %v702_v18 = vpack.c.bf16 %v701_v17, %v701_v17 }
 0x82c   : > { %1740 = vmatmul.mubr.msk.bf16.vlgmr.msra.gmra.mrb[0].mxu0 %vm314_vm0, %v702_v18 }
 0x82d   : > { %1767 = vmatprep.mubr.msk.bf16.mxu0 %vm2012_vm1, %v2011_v8  ;;  %1764 = vmatpush3.bf16.msra.mxu0 %v1887_v58 }
 0x82e   : > { %1765 = vmatprep.subr.bf16.mxu0 %v2011_v8 }
 0x831   : > { %1766 = vmatpush3.bf16.msra.mxu0 %v1888_v59 }
 0x8ff   : > { %v761_v28 = vpop.f32.mrb[0].mxu0 }
 0x900   : > { %v762_v29 = vadd.f32 %v1583_v27, %v761_v28  ;;  %v1741_v30 = vpop.f32.mrb[1].mxu0 }
 0x901   : > { %v764_v31 = vpop.f32.mrb[2].mxu0 }
 0x902   : > { %v768_v26 = vmul.f32 0.044715, %v762_v29  ;;  %v1742_v32 = vpop.f32.mrb[3].mxu0  ;;  %v767_v38 = vmul.f32 0.5, %v762_v29 }
 0x904   : > { %v769_v33 = vmul.f32 %v768_v26, %v762_v29 }
 0x906   : > { %v770_v34 = vmul.f32 %v769_v33, %v762_v29 }
 0x908   : > { %v771_v35 = vadd.f32 %v770_v34, %v762_v29 }
 0x90a   : > { %v772_v36 = vmul.f32 0.7978846, %v771_v35 }
 0x90c   : > { %1921 = vtanh.f32 %v772_v36 }
 0x916   : > { %v1922_v37 = vpop.eup %1921 }
 0x917   : > { %v774_v39 = vadd.f32 1.0, %v1922_v37 }
 0x919   : > { %v775_v40 = vmul.f32 %v774_v39, %v767_v38 }
 0x91b   : > { %v776_v41 = vpack.c.bf16 %v775_v40, %v775_v40 }
 0x91d   : > { %1760 = vmatmul.mubr.bf16.vlgmr.msra.gmra.mrb[16].mxu1 %v776_v41 }
 0x91e   : > { %1795 = vmatprep.mubr.msk.bf16.mxu1 %vm2012_vm1, %v2011_v8 }
 0x9f0   : > { %v875_v42 = vpop.f32.mrb[16].mxu1 }
 0x9f1   : > { %v881_v44 = vadd.f32 %v875_v42, %v2201_v61  ;;  %v1761_v45 = vpop.f32.mrb[17].mxu1 }
 0x9f2   : > { %v878_v46 = vpop.f32.mrb[18].mxu1 }
 0x9f3   : > { %v2265_v48 = vadd.f32 %v1595_v43, %v881_v44  ;;  %v1762_v49 = vpop.f32.mrb[19].mxu1 }
 0x9f5   : > { %v890_v50 = vsel %vm314_vm0, %v2265_v48, 0.0 }
 0x9f6   : > { %891 = vadd.xlane.f32.xlu0 %v890_v50 }
 0xa83   : > { %v892_v51 = vpop.xlane.xlu0 %891 }
 0xa84   : > { %v893_v54 = vmul.f32 0.03125, %v892_v51 }
 0xa86   : > { %v894_v55 = vsub.f32 %v2265_v48, %v893_v54 }
 0xa88   : > { %v895_v56 = vmul.f32 %v894_v55, %v894_v55 }
 0xa8a   : > { %v896_v57 = vsel %vm314_vm0, %v895_v56, 0.0 }
 0xa8b   : > { %897 = vadd.xlane.f32.xlu1 %v896_v57 }
 0xb18   : > { %v898_v61 = vpop.xlane.xlu1 %897 }
 0xb19   : > { %v899_v62 = vmul.f32 0.03125, %v898_v61 }
 0xb1b   : > { %v900_v63 = vadd.f32 1e-05, %v899_v62 }
 0xb1d   : > { %1923 = vrsqrt.f32 %v900_v63 }
 0xb27   : > { %v1924_v1 = vpop.eup %1923 }
 0xb28   : > { %v902_v3 = vmul.f32 %v1924_v1, %v894_v55 }
 0xb2a   : > { %v907_v5 = vmul.f32 %v1596_v2, %v902_v3 }
 0xb2c   : > { %v912_v6 = vadd.f32 %v1597_v4, %v907_v5 }
 0xb2e   : > { %v913_v0 = vpack.c.bf16 %v912_v6, %v912_v6 }
 0xb30   : > { %1768 = vmatmul.mubr.msk.bf16.vlgmr.msra.gmra.mrb[4].mxu0 %vm314_vm0, %v913_v0 }
 0xc03   : > { %v973_v9 = vpop.f32.mrb[4].mxu0 }
 0xc04   : > { %v974_v10 = vadd.f32 %v1602_v7, %v973_v9  ;;  %v1769_v11 = vpop.f32.mrb[5].mxu0 }
 0xc05   : > { %v976_v12 = vpop.f32.mrb[6].mxu0 }
 0xc06   : > { %980 = vrot.lane.b32.xlu1 %v974_v10, %s2015_s11  ;;  %v1770_v13 = vpop.f32.mrb[7].mxu0  ;;  %v991_v14 = vpack.c.bf16 %v974_v10, %v974_v10  ;;  %v1889_v12 = vld [vmem:[%s2454_s3 + $0x10] sm:$0xff]  }
 0xc07   : > { %v1890_v13 = vld [vmem:[%s2454_s3 + $0x18] sm:$0xff]  }
 0xc08   : > { %993 = vrot.lane.b32.xlu0 %v991_v14, %s2014_s10  ;;  %s2408_s10 = scalar_lea.hbm %s2457_s6, %s1656_s16 }
 0xc0a   : > { %983 = vrot.lane.b32.xlu1 %v974_v10, %s2013_s9 }
 0xc0c   : > { %986 = vrot.lane.b32.xlu0 %v974_v10, %s2016_s12 }
 0xc78   : > { %v981_v15 = vpop.permute.xlu1 %980 }
 0xc79   : > { %v989_v16 = vpack.c.bf16 %v981_v15, %v974_v10 }
 0xc7a   : > { %v994_v17 = vpop.permute.xlu0 %993 }
 0xc7b   : > { %v1002_v18 = vsel %vm420_vm2, %v994_v17, 0  ;;  %1821 = vmatprep.subr.msk.bf16.mxu0 %vm420_vm2, %v994_v17  ;;  %1773 = vmatprep.mubr.msk.bf16.mxu0 %vm420_vm2, %v989_v16 }
 0xc7c   : > { %1772 = vmatpush3.bf16.xpose.msra.mxu0 %v1002_v18  ;;  %v984_v20 = vpop.permute.xlu1 %983 }
 0xc7e   : > { %v987_v19 = vpop.permute.xlu0 %986 }
 0xc7f   : > { %v990_v21 = vpack.c.bf16 %v987_v19, %v984_v20 }
 0xc83   : > { %1774 = vmatmul.mubr.msk.bf16.vlgmr.msra.gmra.mrb[8].mxu0 %vm420_vm2, %v990_v21 }
 0xd56   : > { %v1775_v22 = vpop.f32.mrb[8].mxu0 }
 0xd57   : > { %v1038_v23 = vpop.f32.mrb[9].mxu0  ;;  %v1055_v29 = vmul.f32 0.35355338, %v1775_v22 }
 0xd58   : > { %v1053_v24 = vmul.f32 0.35355338, %v1038_v23  ;;  %v1776_v25 = vpop.f32.mrb[10].mxu0 }
 0xd59   : > { %v1056_v27 = vmul.f32 0.35355338, %v1776_v25  ;;  %v1041_v28 = vpop.f32.mrb[11].mxu0  ;;  %v1059_v35 = vadd.f32 %v1055_v29, %v2155_v53  ;;  %v1614_v25 = vld [vmem:[%s2452_s1 + $0xd] ss:$0 sm:$0xff] }
 0xd5a   : > { %v1054_v30 = vmul.f32 0.35355338, %v1041_v28  ;;  %v1057_v31 = vadd.f32 %v1053_v24, %v2151_v47 }
 0xd5b   : > { %v1060_v33 = vadd.f32 %v1056_v27, %v2161_v60  ;;  %v1067_v37 = vsel %vm420_vm2, %v1059_v35, -inf }
 0xd5c   : > { %v1061_v26 = vsel %vm420_vm2, %v1057_v31, -inf  ;;  %v1058_v32 = vadd.f32 %v1054_v30, %v2153_v52 }
 0xd5d   : > { %1062 = vmax.xlane.f32.xlu1 %v1061_v26  ;;  %v1070_v36 = vsel %vm420_vm2, %v1060_v33, -inf }
 0xd5e   : > { %v1064_v34 = vsel %vm420_vm2, %v1058_v32, -inf }
 0xd5f   : > { %1065 = vmax.xlane.f32.xlu0 %v1064_v34 }
 0xd61   : > { %1071 = vmax.xlane.f32.xlu1 %v1070_v36 }
 0xd63   : > { %1068 = vmax.xlane.f32.xlu0 %v1067_v37 }
 0xdea   : > { %v1063_v38 = vpop.xlane.xlu1 %1062 }
 0xdeb   : > { %v1073_v41 = vsub.f32 %v1057_v31, %v1063_v38  ;;  %v1891_v38 = vld [vmem:[%s2455_s4 + $0x10] sm:$0xff]  }
 0xdec   : > { %v1066_v47 = vpop.xlane.xlu0 %1065  ;;  %1792 = vmatpush3.bf16.msra.mxu1 %v1891_v38 }
 0xded   : > { %v1074_v39 = vsub.f32 %v1058_v32, %v1066_v47  ;;  %v1077_v45 = vmul.f32 1.442695, %v1073_v41  ;;  %1793 = vmatprep.subr.bf16.mxu1 %v2011_v8  ;;  %v1893_v47 = vld [vmem:[%s2456_s5 + $0x40] sm:$0xff]  }
 0xdee   : > { %v1072_v40 = vpop.xlane.xlu1 %1071 }
 0xdef   : > { %v1079_v52 = vmul.f32 1.442695, %v1074_v39  ;;  %v1076_v42 = vsub.f32 %v1060_v33, %v1072_v40 }
 0xdf0   : > { %v1069_v60 = vpop.xlane.xlu0 %1068 }
 0xdf1   : > { %1925 = vpow2.f32 %v1079_v52  ;;  %v1083_v43 = vmul.f32 1.442695, %v1076_v42  ;;  %v1075_v44 = vsub.f32 %v1059_v35, %v1069_v60  ;;  %v1618_v42 = vld [vmem:[%s2452_s1 + $0xa] ss:$0 sm:$0xff] }
 0xdf3   : > { %1927 = vpow2.f32 %v1083_v43  ;;  %v1081_v53 = vmul.f32 1.442695, %v1075_v44  ;;  %v1619_v43 = vld [vmem:[%s2452_s1 + $0xb] ss:$0 sm:$0xff] }
 0xdf5   : > { %1929 = vpow2.f32 %v1081_v53 }
 0xdf6   : > { %1931 = vpow2.f32 %v1077_v45 }
 0xdfb   : > { %v1926_v46 = vpop.eup %1925 }
 0xdfc   : > { %v1088_v49 = vsel %vm420_vm2, %v1926_v46, 0.0 }
 0xdfd   : > { %v1928_v50 = vpop.eup %1927  ;;  %1089 = vadd.xlane.f32.xlu1 %v1088_v49  ;;  %v1895_v49 = vld [vmem:[%s2456_s5 + $0x50] sm:$0xff]  }
 0xdfe   : > { %v1094_v54 = vsel %vm420_vm2, %v1928_v50, 0.0 }
 0xdff   : > { %v1930_v51 = vpop.eup %1929 }
 0xe00   : > { %v1091_v55 = vsel %vm420_vm2, %v1930_v51, 0.0  ;;  %v1932_v56 = vpop.eup %1931 }
 0xe01   : > { %1095 = vadd.xlane.f32.xlu1 %v1094_v54  ;;  %1092 = vadd.xlane.f32.xlu0 %v1091_v55  ;;  %v1085_v57 = vsel %vm420_vm2, %v1932_v56, 0.0  ;;  %v1898_v54 = vld [vmem:[%s2456_s5 + $0x68] sm:$0xff]   ;;  %v1899_v55 = vld [vmem:[%s2456_s5 + $0x70] sm:$0xff]  }
 0xe05   : > { %1086 = vadd.xlane.f32.xlu0 %v1085_v57  ;;  %v1624_v57 = vld [vmem:[%s2452_s1 + $0xe] ss:$0 sm:$0xff] }
 0xe1b   : > { %1107 = vrot.lane.b32.xlu0 %v991_v14, %s2018_s13  ;;  %s2461_s13 = smov 16  }
 0xe8a   : > { %v1090_v58 = vpop.xlane.xlu1 %1089 }
 0xe8e   : > { %v1096_v59 = vpop.xlane.xlu1 %1095  ;;  %v1093_v61 = vpop.xlane.xlu0 %1092 }
 0xe8f   : > { %1933 = vrcp.f32 %v1096_v59 }
 0xe90   : > { %1935 = vrcp.f32 %v1093_v61 }
 0xe91   : > { %1937 = vrcp.f32 %v1090_v58 }
 0xe92   : > { %v1087_v62 = vpop.xlane.xlu0 %1086 }
 0xe93   : > { %1939 = vrcp.f32 %v1087_v62 }
 0xe96   : > { %v1108_v63 = vpop.permute.xlu0 %1107 }
 0xe97   : > { %v1116_v1 = vsel %vm541_vm7, %v1108_v63, 0  ;;  %1822 = vmatprep.subr.msk.bf16.mxu0 %vm541_vm7, %v1108_v63 }
 0xe98   : > { %1778 = vmatpush3.bf16.msra.mxu0 %v1116_v1 }
 0xe99   : > { %v1934_v2 = vpop.eup %1933  ;;  %1783 = vmatprep.subr.bf16.mxu0 %v2011_v8 }
 0xe9a   : > { %v1936_v3 = vpop.eup %1935  ;;  %v1104_v6 = vmul.f32 %v1934_v2, %v1928_v50  ;;  %v1896_v50 = vld [vmem:[%s2456_s5 + $0x58] sm:$0xff]  }
 0xe9b   : > { %v1938_v4 = vpop.eup %1937  ;;  %v1103_v0 = vmul.f32 %v1936_v3, %v1930_v51  ;;  %v1897_v51 = vld [vmem:[%s2456_s5 + $0x60] sm:$0xff]  }
 0xe9c   : > { %v1102_v9 = vmul.f32 %v1938_v4, %v1926_v46  ;;  %v1894_v46 = vld [vmem:[%s2456_s5 + $0x48] sm:$0xff]  }
 0xe9d   : > { %v1940_v5 = vpop.eup %1939  ;;  %v1106_v11 = vpack.c.bf16 %v1104_v6, %v1103_v0 }
 0xe9e   : > { %v1101_v7 = vmul.f32 %v1940_v5, %v1932_v56  ;;  %v1900_v56 = vld [vmem:[%s2456_s5 + $0x78] sm:$0xff]  }
 0xea0   : > { %v1105_v10 = vpack.c.bf16 %v1102_v9, %v1101_v7 }
 0xea2   : > { %1779 = vmatprep.mubr.msk.bf16.mxu0 %vm420_vm2, %v1105_v10 }
 0xea3   : > { %1780 = vmatmul.mubr.msk.bf16.vlgmr.msra.gmra.mrb[12].mxu0 %vm420_vm2, %v1106_v11  ;;  %v1652_v11 = vld [vmem:[%s2452_s1 + $0xf] ss:$0 sm:$0xff] }
 0xea4   : > { %1787 = vmatprep.mubr.msk.bf16.mxu0 %vm2012_vm1, %v2011_v8  ;;  %1784 = vmatpush3.bf16.msra.mxu0 %v1889_v12 }
 0xea5   : > { %1785 = vmatprep.subr.bf16.mxu0 %v2011_v8 }
 0xea8   : > { %1786 = vmatpush3.bf16.msra.mxu0 %v1890_v13 }
 0xea9   : > { %1799 = vmatprep.subr.bf16.mxu0 %v2011_v8 }
 0xf76   : > { %v1781_v14 = vpop.f32.mrb[12].mxu0 }
 0xf77   : > { %v1152_v15 = vpop.f32.mrb[13].mxu0 }
 0xf78   : > { %v1782_v16 = vpop.f32.mrb[14].mxu0 }
 0xf79   : > { %1176 = vrot.lane.b32.xlu0 %v1782_v16, %s2019_s18  ;;  %v1155_v17 = vpop.f32.mrb[15].mxu0  ;;  %s240_s18 = sand.u32 1, %s2001_s22  }
 0xf7a   : > { %1168 = vrot.lane.b32.xlu1 %v1155_v17, %s2020_s19  ;;  %s1565_s29 = sshll.u32 %s240_s18, 3  ;;  %s1489_s11 = scalar_lea.sflag [#allocation3], %s240_s18 }
 0xf7b   : > { %s242_s17 = scalar_lea.vmem [#allocation2], %s1565_s29 }
 0xf7c   : > { %s1502_s26 = sshll.u32 %s242_s17, 4  ;;  %s2410_s26 = int_to_ptr.vmem [resolvable:$true] %s1502_s26 }
 0xf7d   : > { %s1947_s12 = scalar_lea.vmem %s2410_s26, 128 }
 0xf7e   : > { %1172 = vrot.lane.b32.xlu1 %v1781_v14, %s2461_s13  ;;  %p1948_p11 = scmp.ne.s32.totalorder %s2410_s26, %s1947_s12  ;;  %s1951_s13 = sshll.u32 %s2022_s25, 4  ;;  %s1952_s13 = int_to_ptr.vmem [resolvable:$false] %s1951_s13 }
 0xf7f   : > { %s1953_s29 = scalar_lea.vmem %s1952_s13, 256  ;;  %p1954_p0 = scmp.lt.s32.totalorder %s2410_s26, %s1952_s13 }
 0xf80   : > { %p1949_p12 = pnand %p1948_p11, %p2096_p5  ;;  %p1955_p1 = scmp.lt.s32.totalorder %s1953_s29, %s1947_s12 }
 0xf82   : > { %p1950_p13 = pneg %p1949_p12  ;;  %p1956_p2 = por %p1955_p1, %p1954_p0 }
 0xf84   : > { %p1957_p3 = pnand %p1956_p2, %p1950_p13 }
 0xfeb   : > { %v1177_v21 = vpop.permute.xlu0 %1176 }
 0xfec   : > { %v1169_v18 = vpop.permute.xlu1 %1168 }
 0xfed   : > { %v1179_v19 = vsel %vm420_vm2, %v1152_v15, %v1169_v18 }
 0xff0   : > { %v1173_v20 = vpop.permute.xlu1 %1172 }
 0xff1   : > { %v1180_v22 = vsel %vm607_vm8, %v1179_v19, %v1173_v20 }
 0xff2   : > { %v1181_v23 = vsel %vm609_vm9, %v1180_v22, %v1177_v21 }
 0xff3   : > { %v1182_v24 = vpack.c.bf16 %v1181_v23, %v1181_v23 }
 0xff5   : > { %1788 = vmatmul.mubr.msk.bf16.vlgmr.msra.gmra.mrb[16].mxu0 %vm314_vm0, %v1182_v24 }
 0xff6   : > { %1815 = vmatprep.mubr.msk.bf16.mxu0 %vm2012_vm1, %v2011_v8  ;;  %1800 = vmatpush3.bf16.msra.mxu0 %v1893_v47 }
 0xff7   : > { %1801 = vmatprep.subr.bf16.mxu0 %v2011_v8 }
 0xffa   : > { %1802 = vmatpush3.bf16.msra.mxu0 %v1894_v46 }
 0xffb   : > { %1803 = vmatprep.subr.bf16.mxu0 %v2011_v8 }
 0xffe   : > { %1804 = vmatpush3.bf16.msra.mxu0 %v1895_v49 }
 0xfff   : > { %1805 = vmatprep.subr.bf16.mxu0 %v2011_v8 }
0x1002   : > { %1806 = vmatpush3.bf16.msra.mxu0 %v1896_v50 }
0x1003   : > { %1807 = vmatprep.subr.bf16.mxu0 %v2011_v8 }
0x1006   : > { %1808 = vmatpush3.bf16.msra.mxu0 %v1897_v51 }
0x1007   : > { %1809 = vmatprep.subr.bf16.mxu0 %v2011_v8 }
0x100a   : > { %1810 = vmatpush3.bf16.msra.mxu0 %v1898_v54 }
0x100b   : > { %1811 = vmatprep.subr.bf16.mxu0 %v2011_v8 }
0x100e   : > { %1812 = vmatpush3.bf16.msra.mxu0 %v1899_v55 }
0x100f   : > { %1813 = vmatprep.subr.bf16.mxu0 %v2011_v8 }
0x1012   : > { %1814 = vmatpush3.bf16.msra.mxu0 %v1900_v56 }
0x10c8   : > { %v1242_v27 = vpop.f32.mrb[16].mxu0 }
0x10c9   : > { %v1243_v28 = vadd.f32 %v1614_v25, %v1242_v27  ;;  %v1789_v29 = vpop.f32.mrb[17].mxu0 }
0x10ca   : > { %v1245_v30 = vpop.f32.mrb[18].mxu0 }
0x10cb   : > { %v2337_v31 = vadd.f32 %v1243_v28, %v2265_v48  ;;  %v1790_v26 = vpop.f32.mrb[19].mxu0  ;;  %v1892_v48 = vld [vmem:[%s2455_s4 + $0x18] sm:$0xff]   ;;  %v1653_v28 = vld [vmem:[%s2452_s1 + $0x10] ss:$0 sm:$0xff]  ;;  %v1654_v30 = vld [vmem:[%s2452_s1 + $0x11] ss:$0 sm:$0xff] }
0x10cc   : > { %1794 = vmatpush3.bf16.msra.mxu1 %v1892_v48 }
0x10cd   : > { %v1251_v32 = vsel %vm314_vm0, %v2337_v31, 0.0 }
0x10ce   : > { %1252 = vadd.xlane.f32.xlu1 %v1251_v32 }
0x115b   : > { %v1253_v33 = vpop.xlane.xlu1 %1252 }
0x115c   : > { %v1254_v34 = vmul.f32 0.03125, %v1253_v33 }
0x115e   : > { %v1255_v35 = vsub.f32 %v2337_v31, %v1254_v34 }
0x1160   : > { %v1256_v36 = vmul.f32 %v1255_v35, %v1255_v35 }
0x1162   : > { %v1257_v37 = vsel %vm314_vm0, %v1256_v36, 0.0 }
0x1163   : > { %1258 = vadd.xlane.f32.xlu0 %v1257_v37 }
0x11f0   : > { %v1259_v39 = vpop.xlane.xlu0 %1258 }
0x11f1   : > { %v1260_v40 = vmul.f32 0.03125, %v1259_v39 }
0x11f3   : > { %v1261_v41 = vadd.f32 1e-05, %v1260_v40 }
0x11f5   : > { %1941 = vrsqrt.f32 %v1261_v41 }
0x11ff   : > { %v1942_v52 = vpop.eup %1941 }
0x1200   : > { %v1263_v60 = vmul.f32 %v1942_v52, %v1255_v35 }
0x1202   : > { %v1268_v44 = vmul.f32 %v1618_v42, %v1263_v60 }
0x1204   : > { %v1273_v45 = vadd.f32 %v1619_v43, %v1268_v44 }
0x1206   : > { %v1274_v53 = vpack.c.bf16 %v1273_v45, %v1273_v45 }
0x1208   : > { %1796 = vmatmul.mubr.msk.bf16.vlgmr.msra.gmra.mrb[20].mxu1 %vm314_vm0, %v1274_v53 }
0x12db   : > { %v1334_v58 = vpop.f32.mrb[20].mxu1 }
0x12dc   : > { %v1335_v59 = vadd.f32 %v1624_v57, %v1334_v58  ;;  %v1797_v61 = vpop.f32.mrb[21].mxu1 }
0x12dd   : > { %v1337_v62 = vpop.f32.mrb[22].mxu1 }
0x12de   : > { %v1341_v63 = vmul.f32 0.044715, %v1335_v59  ;;  %v1798_v1 = vpop.f32.mrb[23].mxu1  ;;  %v1340_v0 = vmul.f32 0.5, %v1335_v59 }
0x12e0   : > { %v1342_v2 = vmul.f32 %v1341_v63, %v1335_v59 }
0x12e2   : > { %v1343_v3 = vmul.f32 %v1342_v2, %v1335_v59 }
0x12e4   : > { %v1344_v4 = vadd.f32 %v1343_v3, %v1335_v59 }
0x12e6   : > { %v1345_v5 = vmul.f32 0.7978846, %v1344_v4 }
0x12e8   : > { %1943 = vtanh.f32 %v1345_v5 }
0x12f2   : > { %v1944_v6 = vpop.eup %1943 }
0x12f3   : > { %v1347_v7 = vadd.f32 1.0, %v1944_v6 }
0x12f5   : > { %v1348_v8 = vmul.f32 %v1347_v7, %v1340_v0 }
0x12f7   : > { %v1349_v9 = vpack.c.bf16 %v1348_v8, %v1348_v8 }
0x12f9   : > { %1816 = vmatmul.mubr.bf16.vlgmr.msra.gmra.mrb[20].mxu0 %v1349_v9 }
0x13cc   : > { %v1449_v10 = vpop.f32.mrb[20].mxu0 }
0x13cd   : > { %v1455_v12 = vadd.f32 %v1449_v10, %v2337_v31  ;;  %v1817_v13 = vpop.f32.mrb[21].mxu0 }
0x13ce   : > { %v1452_v14 = vpop.f32.mrb[22].mxu0 }
0x13cf   : > { %v1818_v15 = vpop.f32.mrb[23].mxu0  ;;  %v1461_v16 = vadd.f32 %v1652_v11, %v1455_v12 }
0x13d1   : > { %v1464_v17 = vsel %vm314_vm0, %v1461_v16, 0.0 }
0x13d2   : > { %1465 = vadd.xlane.f32.xlu0 %v1464_v17 }
0x145f   : > { %v1466_v18 = vpop.xlane.xlu0 %1465 }
0x1460   : > { %v1467_v19 = vmul.f32 0.03125, %v1466_v18 }
0x1462   : > { %v1468_v20 = vsub.f32 %v1461_v16, %v1467_v19 }
0x1464   : > { %v1469_v21 = vmul.f32 %v1468_v20, %v1468_v20 }
0x1466   : > { %v1470_v22 = vsel %vm314_vm0, %v1469_v21, 0.0 }
0x1467   : > { %1471 = vadd.xlane.f32.xlu1 %v1470_v22 }
0x14f4   : > { %v1472_v23 = vpop.xlane.xlu1 %1471 }
0x14f5   : > { %v1473_v24 = vmul.f32 0.03125, %v1472_v23 }
0x14f7   : > { %v1474_v25 = vadd.f32 1e-05, %v1473_v24 }
0x14f9   : > { %1945 = vrsqrt.f32 %v1474_v25 }
0x1503   : > { %v1946_v27 = vpop.eup %1945 }
0x1504   : > { %v1476_v29 = vmul.f32 %v1946_v27, %v1468_v20 }
0x1506   : > { %v1481_v31 = vmul.f32 %v1653_v28, %v1476_v29 }
0x1508   : > { %v1486_v26 = vadd.f32 %v1654_v30, %v1481_v31 }
0x150a   : > { %1487 = vst.msk [vmem:[%s242_s17] sm:$0xff] %vm314_vm0, %v1486_v26 }
0x150b   : > { %1960 = shalt.err (!%p1957_p3)
}
0x150c   : > { %s1961_s18 = scalar_lea.hbm %s2408_s10, 128  ;;  %s1965_s14 = scalar_lea.hbm %s2457_s6, 256 }
0x150d   : > { %p1962_p4 = scmp.ne.s32.totalorder %s2408_s10, %s1961_s18  ;;  %p1966_p9 = scmp.lt.u32.totalorder %s2408_s10, %s2457_s6 }
0x150e   : > { %p1967_p10 = scmp.lt.u32.totalorder %s1965_s14, %s1961_s18  ;;  %p1969_p12 = scmp.lt.u32.totalorder %s1961_s18, %s2408_s10 }
0x150f   : > { %p1963_p7 = pnand %p1962_p4, %p2096_p5 }
0x1510   : > { %p1968_p11 = por %p1967_p10, %p1966_p9 }
0x1511   : > { %p1964_p8 = pneg %p1963_p7 }
0x1512   : > { %p1970_p13 = por %p1969_p12, %p1968_p11 }
0x1514   : > { %p1971_p0 = pnand %p1970_p13, %p1964_p8 }
0x1516   : > { %1974 = shalt.err (!%p1971_p0)
}
0x1517   : > { %1823 = dma.vmem_to_hbm [thread:$0]  (%p2096_p5), %s2410_s26, 128, %s2408_s10, %s1489_s11  }
0x1518 PF: > { %p1829_p1 = scmp.ge.s32.totalorder %s2009_s24, 2  ;;  %s1514_s17 = sand.u32 1, %s1997_s21  }
0x1519   : > { %s1515_s28 = scalar_lea.sflag [#allocation3], %s1514_s17 }
0x151a   : > { %p1826_p2 = pnand %p1829_p1, %p2100_p6 }
0x151c   : > { %1992 = dma.done.wait (!%p1826_p2), %s1515_s28, 128  }
0x151d   : > { %1994 = vsyncadd (!%p1826_p2), %s1515_s28, 4294967168  ;;  %p16_p3 = scmp.ge.s32.totalorder %s2083_s27, 4   ;;  %s2462_s21 = smov %s2001_s22 }
0x151e   : > { %s2463_s22 = smov %s2005_s23  ;;  %s2464_s23 = smov %s2094_s30 }
0x151f   : > { %s2465_s24 = smov %s2083_s27  ;;  %18 = sbr.rel (!%p16_p3) target bundleno = 3 (0x3), region = 83 }
0x1526   :  { %1520 = vsyncpa [#allocation3], 1 }
0x1527   :  { %1522 = vsyncpa [#allocation3 + $0x1], 1 }

</bundles_post_ra>
